<compile_context>
chip_gen: v7x
topology: tpu7x:2x2x1
jax: 0.10.0
libtpu: 0.0.40
codegen_flags: <defaults>
</compile_context>

<pallas_src>
import jax
import jax.numpy as jnp
from jax import lax
from jax.experimental import pallas as pl
from jax.experimental.pallas import tpu as pltpu

# ----- static problem configuration (matches the module at small shapes) -----
N = 2
H = W = 16
HID = 4                       # hidden_features
HID15 = int(HID * 1.5)        # 6
HID2 = HID * 2                # 8
CIN = HID * 4                 # 16: the residual add requires input == 4*hidden
COUT = 8                      # output_features
SCALE = 1.0
BN_EPS = 1e-5

HP, WP = H + 2, W + 2         # zero-padded spatial dims (18, 18)
L = HP * WP                   # 324: flattened padded image
LPAD = 384                    # lane-dense per-image width (3 * 128)


def inception_kernel(x_ref, mask_ref, w1x1_ref, wconv_ref, ball_ref, o_ref):
    x = x_ref[...]                    # (CIN, LT)  all images, channels on sublanes
    mask = mask_ref[...]              # (1, LT)    1.0 at interior pixels, else 0.0
    w1 = w1x1_ref[...]                # (24, CIN)  packed 1x1 weights
    wconv = wconv_ref[...]            # (24, 72)   packed 3x3 tap weights
    b_all = ball_ref[...]             # (48, 1)    packed biases
    lt = x.shape[-1]                  # 768 = N * LPAD (multiple of 128)

    # ---- all four 1x1 convs on x in one MXU pass ------------------------------
    # rows 0:4  -> branch1 head (w1a)   rows 4:8   -> branch2 head (w2a)
    # rows 8:12 -> branch0 (w0)         rows 16:24 -> final conv on x (Wf @ x)
    full = jnp.dot(w1, x, preferred_element_type=jnp.float32)       # (24, LT)
    head = jnp.maximum(full[0:12] + b_all[0:12], 0.0)               # folded BN + ReLU
    resid = full[16:24]                                             # Wf @ x (no bias/relu)

    m_in = head[0:8] * mask           # [t1a; t2a]: feeds a 3x3 -> re-zero pad ring
    t0 = head[8:12]                   # branch0 output (never feeds a 3x3 -> no mask)

    def conv3x3(src, w_taps, bias):
        # src: (8, LT) zero-ringed input; w_taps: (cout, 72), tap k = 3*dy+dx at
        # cols 8k:8k+8.  Tap (dy,dx) needs src[p + (dy-1)*WP + (dx-1)]; produced
        # as a static lane roll (XLU slot).  Circular wrap only affects output at
        # pad-ring / padding lanes (masked later or cropped by the wrapper).
        acc = None
        for dy in range(3):
            for dx in range(3):
                k = dy * 3 + dx
                s = (dy - 1) * WP + (dx - 1)
                rolled = src if s == 0 else pltpu.roll(src, (-s) % lt, 1)
                term = jnp.dot(w_taps[:, 8 * k:8 * k + 8], rolled,
                               preferred_element_type=jnp.float32)
                acc = term if acc is None else acc + term
        return acc + bias

    # ---- branch1 3x3 (w1b) + branch2 first 3x3 (w2b): one block-diagonal pass --
    mid = conv3x3(m_in, wconv[0:16], b_all[16:32])     # rows 0:6 = t2b, 8:12 = t1
    t2b = jnp.maximum(mid[0:8], 0.0) * mask            # rows 6:8 are exactly zero
    t1 = jnp.maximum(mid[8:12], 0.0)

    # ---- branch2 second 3x3 (w2c) ---------------------------------------------
    t2c = jnp.maximum(conv3x3(t2b, wconv[16:24], b_all[32:40]), 0.0)   # (8, LT)

    # ---- out = relu( Wf @ (scale*cat(t0,t1,t2c) + x) + bf );  Wf@x == resid ----
    wf = w1[16:24]                                     # (COUT, CIN)
    branch = (jnp.dot(wf[:, 0:4], t0, preferred_element_type=jnp.float32)
              + jnp.dot(wf[:, 4:8], t1, preferred_element_type=jnp.float32)
              + jnp.dot(wf[:, 8:16], t2c, preferred_element_type=jnp.float32))
    o_ref[...] = jnp.maximum(SCALE * branch + resid + b_all[40:48], 0.0)


@jax.jit
def inception_forward(x_nchw, packed):
    w_1x1, w_conv, b_all = packed
    n = x_nchw.shape[0]
    lt = n * LPAD

    # NCHW -> zero-pad spatial -> flatten -> lane-pad to 384 -> fuse batch on lanes.
    xp = jnp.pad(x_nchw.astype(jnp.float32), ((0, 0), (0, 0), (1, 1), (1, 1)))
    x_flat = xp.reshape(n, CIN, L)
    x_flat = jnp.pad(x_flat, ((0, 0), (0, 0), (0, LPAD - L)))
    x_fused = jnp.transpose(x_flat, (1, 0, 2)).reshape(CIN, lt)     # (CIN, N*LPAD)

    mask1 = jnp.zeros((HP, WP), jnp.float32).at[1:HP - 1, 1:WP - 1].set(1.0)
    mask1 = jnp.pad(mask1.reshape(1, L), ((0, 0), (0, LPAD - L)))
    mask = jnp.tile(mask1, (1, n))                                  # (1, N*LPAD)

    out_fused = pl.pallas_call(
        inception_kernel,
        out_shape=jax.ShapeDtypeStruct((COUT, lt), jnp.float32),
        grid_spec=pltpu.PrefetchScalarGridSpec(
            num_scalar_prefetch=0,
            grid=(1,),
            in_specs=[
                pl.BlockSpec((CIN, lt), lambda i: (0, 0)),      # fused x
                pl.BlockSpec((1, lt), lambda i: (0, 0)),        # interior mask
                pl.BlockSpec((24, CIN), lambda i: (0, 0)),      # packed 1x1 weights
                pl.BlockSpec((24, 9 * HID2), lambda i: (0, 0)),  # packed 3x3 taps
                pl.BlockSpec((48, 1), lambda i: (0, 0)),        # packed biases
            ],
            out_specs=pl.BlockSpec((COUT, lt), lambda i: (0, 0)),
        ),
        compiler_params=pltpu.CompilerParams(
            dimension_semantics=("arbitrary",)),
    )(x_fused, mask, w_1x1, w_conv, b_all)

    out = out_fused.reshape(COUT, n, LPAD).transpose(1, 0, 2)[:, :, :L]
    out = out.reshape(n, COUT, HP, WP)[:, :, 1:HP - 1, 1:WP - 1]
    return out


def make_raw_params(key):
    """Raw PyTorch-style parameters: conv weights (OIHW), BN (gamma, beta, mean, var)."""
    def basic(k, cin, cout, ks):
        kw, kg, kb, km, kv = jax.random.split(k, 5)
        w = 0.1 * jax.random.normal(kw, (cout, cin, ks, ks), jnp.float32)
        gamma = 1.0 + 0.1 * jax.random.normal(kg, (cout,), jnp.float32)
        beta = 0.1 * jax.random.normal(kb, (cout,), jnp.float32)
        mean = 0.1 * jax.random.normal(km, (cout,), jnp.float32)
        var = 0.5 + jax.random.uniform(kv, (cout,), jnp.float32)
        return (w, gamma, beta, mean, var)

    ks = jax.random.split(key, 8)
    return {
        "b0": basic(ks[0], CIN, HID, 1),
        "b1a": basic(ks[1], CIN, HID, 1),
        "b1b": basic(ks[2], HID, HID, 3),
        "b2a": basic(ks[3], CIN, HID, 1),
        "b2b": basic(ks[4], HID, HID15, 3),
        "b2c": basic(ks[5], HID15, HID2, 3),
        "final": (0.1 * jax.random.normal(ks[6], (COUT, CIN, 1, 1), jnp.float32),
                  0.1 * jax.random.normal(ks[7], (COUT,), jnp.float32)),
    }


def pack_params(raw):
    """Fold eval-mode BN into the convs and pack everything into 3 kernel operands."""
    def fold(p):
        w, g, b, m, v = p
        s = g / jnp.sqrt(v + BN_EPS)
        return w * s[:, None, None, None], b - m * s

    w0, b0 = fold(raw["b0"])
    w1a, b1a = fold(raw["b1a"])
    w1b, b1b = fold(raw["b1b"])
    w2a, b2a = fold(raw["b2a"])
    w2b, b2b = fold(raw["b2b"])
    w2c, b2c = fold(raw["b2c"])
    wf, bf = raw["final"]

    # (24, CIN): rows 0:4 w1a, 4:8 w2a, 8:12 w0, 12:16 zero, 16:24 final conv Wf.
    w_1x1 = jnp.zeros((24, CIN), jnp.float32)
    w_1x1 = w_1x1.at[0:4].set(w1a.reshape(HID, CIN))
    w_1x1 = w_1x1.at[4:8].set(w2a.reshape(HID, CIN))
    w_1x1 = w_1x1.at[8:12].set(w0.reshape(HID, CIN))
    w_1x1 = w_1x1.at[16:24].set(wf.reshape(COUT, CIN))

    # (24, 72): tap k (= 3*dy+dx) in columns 8k:8k+8.
    #   rows 0:6   <- w2b (reads t2a at tap cols 4:8)  \  block-diagonal fused "mid" 3x3
    #   rows 8:12  <- w1b (reads t1a at tap cols 0:4)  /
    #   rows 16:24 <- w2c (reads t2b at tap cols 0:6)     "tail" 3x3
    w_conv = jnp.zeros((24, 9 * HID2), jnp.float32)
    for dy in range(3):
        for dx in range(3):
            k = dy * 3 + dx
            w_conv = w_conv.at[0:6, 8 * k + 4:8 * k + 8].set(w2b[:, :, dy, dx])
            w_conv = w_conv.at[8:12, 8 * k + 0:8 * k + 4].set(w1b[:, :, dy, dx])
            w_conv = w_conv.at[16:24, 8 * k + 0:8 * k + 6].set(w2c[:, :, dy, dx])

    # (48, 1): 0:12 head biases [b1a, b2a, b0], 16:22 b2b, 24:28 b1b,
    #          32:40 b2c, 40:48 final conv bias.
    b_all = jnp.zeros((48,), jnp.float32)
    b_all = b_all.at[0:4].set(b1a).at[4:8].set(b2a).at[8:12].set(b0)
    b_all = b_all.at[16:22].set(b2b).at[24:28].set(b1b)
    b_all = b_all.at[32:40].set(b2c).at[40:48].set(bf)
    return (w_1x1, w_conv, b_all.reshape(48, 1))


def inception_reference(x, raw):
    """Pure-JAX mirror of the PyTorch module (eval-mode BatchNorm), NCHW."""
    def bc(z, p, pad):
        w, g, b, m, v = p
        y = lax.conv_general_dilated(z, w, (1, 1), ((pad, pad), (pad, pad)),
                                     dimension_numbers=("NCHW", "OIHW", "NCHW"))
        s = g / jnp.sqrt(v + BN_EPS)
        y = y * s[None, :, None, None] + (b - m * s)[None, :, None, None]
        return jnp.maximum(y, 0.0)

    x0 = bc(x, raw["b0"], 0)
    x1 = bc(bc(x, raw["b1a"], 0), raw["b1b"], 1)
    x2 = bc(bc(bc(x, raw["b2a"], 0), raw["b2b"], 1), raw["b2c"], 1)
    out = jnp.concatenate([x0, x1, x2], axis=1) * SCALE + x
    wf, bf = raw["final"]
    out = lax.conv_general_dilated(out, wf, (1, 1), ((0, 0), (0, 0)),
                                   dimension_numbers=("NCHW", "OIHW", "NCHW"))
    return jnp.maximum(out + bf[None, :, None, None], 0.0)


if __name__ == "__main__":
    key = jax.random.PRNGKey(0)
    kx, kp = jax.random.split(key)
    x = jax.random.normal(kx, (N, CIN, H, W), jnp.float32)   # NCHW, like PyTorch
    raw = make_raw_params(kp)
    packed = pack_params(raw)

    out = jax.block_until_ready(inception_forward(x, packed))
    assert out.shape == (N, COUT, H, W), out.shape
    assert bool(jnp.all(jnp.isfinite(out)))

    ref = inception_reference(x, raw)
    max_err = float(jnp.max(jnp.abs(out - ref)))
    assert max_err < 2e-3, f"mismatch vs pure-JAX reference: {max_err}"
    print("KERNEL_OK")
</pallas_src>

<mosaic_0001>
module attributes {stable_mosaic.version = 11 : i64} {
  func.func @inception_kernel(%arg0: i32, %arg1: memref<16x768xf32, #tpu.memory_space<vmem>>, %arg2: memref<1x768xf32, #tpu.memory_space<vmem>>, %arg3: memref<24x16xf32, #tpu.memory_space<vmem>>, %arg4: memref<24x72xf32, #tpu.memory_space<vmem>>, %arg5: memref<48x1xf32, #tpu.memory_space<vmem>>, %arg6: memref<8x768xf32, #tpu.memory_space<vmem>>) attributes {dimension_semantics = [#tpu.dimension_semantics<arbitrary>], iteration_bounds = array<i64: 1>, scalar_prefetch = 0 : i64, scratch_operands = 0 : i64, tpu.core_type = #tpu.core_type<tc>, window_params = [{pipeline_mode = #tpu.pipeline_mode<synchronous>, transform_indices = @transform_0, window_bounds = array<i64: 16, 768>}, {pipeline_mode = #tpu.pipeline_mode<synchronous>, transform_indices = @transform_1, window_bounds = array<i64: 1, 768>}, {pipeline_mode = #tpu.pipeline_mode<synchronous>, transform_indices = @transform_2, window_bounds = array<i64: 24, 16>}, {pipeline_mode = #tpu.pipeline_mode<synchronous>, transform_indices = @transform_3, window_bounds = array<i64: 24, 72>}, {pipeline_mode = #tpu.pipeline_mode<synchronous>, transform_indices = @transform_4, window_bounds = array<i64: 48, 1>}, {pipeline_mode = #tpu.pipeline_mode<synchronous>, transform_indices = @transform_5, window_bounds = array<i64: 8, 768>}]} {
    %c0 = arith.constant 0 : index
    %c0_0 = arith.constant 0 : index
    %0 = vector.load %arg1[%c0, %c0_0] : memref<16x768xf32, #tpu.memory_space<vmem>>, vector<16x768xf32>
    %c0_1 = arith.constant 0 : index
    %c0_2 = arith.constant 0 : index
    %1 = vector.load %arg2[%c0_1, %c0_2] : memref<1x768xf32, #tpu.memory_space<vmem>>, vector<1x768xf32>
    %c0_3 = arith.constant 0 : index
    %c0_4 = arith.constant 0 : index
    %2 = vector.load %arg3[%c0_3, %c0_4] : memref<24x16xf32, #tpu.memory_space<vmem>>, vector<24x16xf32>
    %c0_5 = arith.constant 0 : index
    %c0_6 = arith.constant 0 : index
    %3 = vector.load %arg4[%c0_5, %c0_6] : memref<24x72xf32, #tpu.memory_space<vmem>>, vector<24x72xf32>
    %c0_7 = arith.constant 0 : index
    %c0_8 = arith.constant 0 : index
    %4 = vector.load %arg5[%c0_7, %c0_8] : memref<48x1xf32, #tpu.memory_space<vmem>>, vector<48x1xf32>
    %cst = arith.constant dense<0.000000e+00> : vector<24x768xf32>
    %5 = tpu.matmul %2, %0, %cst {dimension_numbers = #tpu.dot_dimension_numbers<[1], [0], [0], [1], [0, 0, 1, 1], [], []>} : vector<24x16xf32>, vector<16x768xf32>, vector<24x768xf32> -> vector<24x768xf32>
    %6 = vector.extract_strided_slice %5 {offsets = [0, 0], sizes = [12, 768], strides = [1, 1]} : vector<24x768xf32> to vector<12x768xf32>
    %7 = vector.extract_strided_slice %4 {offsets = [0, 0], sizes = [12, 1], strides = [1, 1]} : vector<48x1xf32> to vector<12x1xf32>
    %8 = vector.broadcast %7 : vector<12x1xf32> to vector<12x768xf32>
    %9 = arith.addf %6, %8 : vector<12x768xf32>
    %cst_9 = arith.constant 0.000000e+00 : f32
    %10 = vector.broadcast %cst_9 : f32 to vector<12x768xf32>
    %11 = arith.maximumf %9, %10 : vector<12x768xf32>
    %12 = vector.extract_strided_slice %5 {offsets = [16, 0], sizes = [8, 768], strides = [1, 1]} : vector<24x768xf32> to vector<8x768xf32>
    %13 = vector.extract_strided_slice %11 {offsets = [0, 0], sizes = [8, 768], strides = [1, 1]} : vector<12x768xf32> to vector<8x768xf32>
    %14 = vector.broadcast %1 : vector<1x768xf32> to vector<8x768xf32>
    %15 = arith.mulf %13, %14 : vector<8x768xf32>
    %16 = vector.extract_strided_slice %11 {offsets = [8, 0], sizes = [4, 768], strides = [1, 1]} : vector<12x768xf32> to vector<4x768xf32>
    %17 = vector.extract_strided_slice %3 {offsets = [0, 0], sizes = [16, 72], strides = [1, 1]} : vector<24x72xf32> to vector<16x72xf32>
    %18 = vector.extract_strided_slice %4 {offsets = [16, 0], sizes = [16, 1], strides = [1, 1]} : vector<48x1xf32> to vector<16x1xf32>
    %c19_i32 = arith.constant 19 : i32
    %19 = tpu.dynamic_rotate %15 by %c19_i32 dim 1 : vector<8x768xf32>, i32 -> vector<8x768xf32>
    %20 = vector.extract_strided_slice %17 {offsets = [0, 0], sizes = [16, 8], strides = [1, 1]} : vector<16x72xf32> to vector<16x8xf32>
    %cst_10 = arith.constant dense<0.000000e+00> : vector<16x768xf32>
    %21 = tpu.matmul %20, %19, %cst_10 {dimension_numbers = #tpu.dot_dimension_numbers<[1], [0], [0], [1], [0, 0, 1, 1], [], []>} : vector<16x8xf32>, vector<8x768xf32>, vector<16x768xf32> -> vector<16x768xf32>
    %c18_i32 = arith.constant 18 : i32
    %22 = tpu.dynamic_rotate %15 by %c18_i32 dim 1 : vector<8x768xf32>, i32 -> vector<8x768xf32>
    %23 = vector.extract_strided_slice %17 {offsets = [0, 8], sizes = [16, 8], strides = [1, 1]} : vector<16x72xf32> to vector<16x8xf32>
    %cst_11 = arith.constant dense<0.000000e+00> : vector<16x768xf32>
    %24 = tpu.matmul %23, %22, %cst_11 {dimension_numbers = #tpu.dot_dimension_numbers<[1], [0], [0], [1], [0, 0, 1, 1], [], []>} : vector<16x8xf32>, vector<8x768xf32>, vector<16x768xf32> -> vector<16x768xf32>
    %25 = arith.addf %21, %24 : vector<16x768xf32>
    %c17_i32 = arith.constant 17 : i32
    %26 = tpu.dynamic_rotate %15 by %c17_i32 dim 1 : vector<8x768xf32>, i32 -> vector<8x768xf32>
    %27 = vector.extract_strided_slice %17 {offsets = [0, 16], sizes = [16, 8], strides = [1, 1]} : vector<16x72xf32> to vector<16x8xf32>
    %cst_12 = arith.constant dense<0.000000e+00> : vector<16x768xf32>
    %28 = tpu.matmul %27, %26, %cst_12 {dimension_numbers = #tpu.dot_dimension_numbers<[1], [0], [0], [1], [0, 0, 1, 1], [], []>} : vector<16x8xf32>, vector<8x768xf32>, vector<16x768xf32> -> vector<16x768xf32>
    %29 = arith.addf %25, %28 : vector<16x768xf32>
    %c1_i32 = arith.constant 1 : i32
    %30 = tpu.dynamic_rotate %15 by %c1_i32 dim 1 : vector<8x768xf32>, i32 -> vector<8x768xf32>
    %31 = vector.extract_strided_slice %17 {offsets = [0, 24], sizes = [16, 8], strides = [1, 1]} : vector<16x72xf32> to vector<16x8xf32>
    %cst_13 = arith.constant dense<0.000000e+00> : vector<16x768xf32>
    %32 = tpu.matmul %31, %30, %cst_13 {dimension_numbers = #tpu.dot_dimension_numbers<[1], [0], [0], [1], [0, 0, 1, 1], [], []>} : vector<16x8xf32>, vector<8x768xf32>, vector<16x768xf32> -> vector<16x768xf32>
    %33 = arith.addf %29, %32 : vector<16x768xf32>
    %34 = vector.extract_strided_slice %17 {offsets = [0, 32], sizes = [16, 8], strides = [1, 1]} : vector<16x72xf32> to vector<16x8xf32>
    %cst_14 = arith.constant dense<0.000000e+00> : vector<16x768xf32>
    %35 = tpu.matmul %34, %15, %cst_14 {dimension_numbers = #tpu.dot_dimension_numbers<[1], [0], [0], [1], [0, 0, 1, 1], [], []>} : vector<16x8xf32>, vector<8x768xf32>, vector<16x768xf32> -> vector<16x768xf32>
    %36 = arith.addf %33, %35 : vector<16x768xf32>
    %c767_i32 = arith.constant 767 : i32
    %37 = tpu.dynamic_rotate %15 by %c767_i32 dim 1 : vector<8x768xf32>, i32 -> vector<8x768xf32>
    %38 = vector.extract_strided_slice %17 {offsets = [0, 40], sizes = [16, 8], strides = [1, 1]} : vector<16x72xf32> to vector<16x8xf32>
    %cst_15 = arith.constant dense<0.000000e+00> : vector<16x768xf32>
    %39 = tpu.matmul %38, %37, %cst_15 {dimension_numbers = #tpu.dot_dimension_numbers<[1], [0], [0], [1], [0, 0, 1, 1], [], []>} : vector<16x8xf32>, vector<8x768xf32>, vector<16x768xf32> -> vector<16x768xf32>
    %40 = arith.addf %36, %39 : vector<16x768xf32>
    %c751_i32 = arith.constant 751 : i32
    %41 = tpu.dynamic_rotate %15 by %c751_i32 dim 1 : vector<8x768xf32>, i32 -> vector<8x768xf32>
    %42 = vector.extract_strided_slice %17 {offsets = [0, 48], sizes = [16, 8], strides = [1, 1]} : vector<16x72xf32> to vector<16x8xf32>
    %cst_16 = arith.constant dense<0.000000e+00> : vector<16x768xf32>
    %43 = tpu.matmul %42, %41, %cst_16 {dimension_numbers = #tpu.dot_dimension_numbers<[1], [0], [0], [1], [0, 0, 1, 1], [], []>} : vector<16x8xf32>, vector<8x768xf32>, vector<16x768xf32> -> vector<16x768xf32>
    %44 = arith.addf %40, %43 : vector<16x768xf32>
    %c750_i32 = arith.constant 750 : i32
    %45 = tpu.dynamic_rotate %15 by %c750_i32 dim 1 : vector<8x768xf32>, i32 -> vector<8x768xf32>
    %46 = vector.extract_strided_slice %17 {offsets = [0, 56], sizes = [16, 8], strides = [1, 1]} : vector<16x72xf32> to vector<16x8xf32>
    %cst_17 = arith.constant dense<0.000000e+00> : vector<16x768xf32>
    %47 = tpu.matmul %46, %45, %cst_17 {dimension_numbers = #tpu.dot_dimension_numbers<[1], [0], [0], [1], [0, 0, 1, 1], [], []>} : vector<16x8xf32>, vector<8x768xf32>, vector<16x768xf32> -> vector<16x768xf32>
    %48 = arith.addf %44, %47 : vector<16x768xf32>
    %c749_i32 = arith.constant 749 : i32
    %49 = tpu.dynamic_rotate %15 by %c749_i32 dim 1 : vector<8x768xf32>, i32 -> vector<8x768xf32>
    %50 = vector.extract_strided_slice %17 {offsets = [0, 64], sizes = [16, 8], strides = [1, 1]} : vector<16x72xf32> to vector<16x8xf32>
    %cst_18 = arith.constant dense<0.000000e+00> : vector<16x768xf32>
    %51 = tpu.matmul %50, %49, %cst_18 {dimension_numbers = #tpu.dot_dimension_numbers<[1], [0], [0], [1], [0, 0, 1, 1], [], []>} : vector<16x8xf32>, vector<8x768xf32>, vector<16x768xf32> -> vector<16x768xf32>
    %52 = arith.addf %48, %51 : vector<16x768xf32>
    %53 = vector.broadcast %18 : vector<16x1xf32> to vector<16x768xf32>
    %54 = arith.addf %52, %53 : vector<16x768xf32>
    %55 = vector.extract_strided_slice %54 {offsets = [0, 0], sizes = [8, 768], strides = [1, 1]} : vector<16x768xf32> to vector<8x768xf32>
    %cst_19 = arith.constant 0.000000e+00 : f32
    %56 = vector.broadcast %cst_19 : f32 to vector<8x768xf32>
    %57 = arith.maximumf %55, %56 : vector<8x768xf32>
    %58 = vector.broadcast %1 : vector<1x768xf32> to vector<8x768xf32>
    %59 = arith.mulf %57, %58 : vector<8x768xf32>
    %60 = vector.extract_strided_slice %54 {offsets = [8, 0], sizes = [4, 768], strides = [1, 1]} : vector<16x768xf32> to vector<4x768xf32>
    %cst_20 = arith.constant 0.000000e+00 : f32
    %61 = vector.broadcast %cst_20 : f32 to vector<4x768xf32>
    %62 = arith.maximumf %60, %61 : vector<4x768xf32>
    %63 = vector.extract_strided_slice %3 {offsets = [16, 0], sizes = [8, 72], strides = [1, 1]} : vector<24x72xf32> to vector<8x72xf32>
    %64 = vector.extract_strided_slice %4 {offsets = [32, 0], sizes = [8, 1], strides = [1, 1]} : vector<48x1xf32> to vector<8x1xf32>
    %c19_i32_21 = arith.constant 19 : i32
    %65 = tpu.dynamic_rotate %59 by %c19_i32_21 dim 1 : vector<8x768xf32>, i32 -> vector<8x768xf32>
    %66 = vector.extract_strided_slice %63 {offsets = [0, 0], sizes = [8, 8], strides = [1, 1]} : vector<8x72xf32> to vector<8x8xf32>
    %cst_22 = arith.constant dense<0.000000e+00> : vector<8x768xf32>
    %67 = tpu.matmul %66, %65, %cst_22 {dimension_numbers = #tpu.dot_dimension_numbers<[1], [0], [0], [1], [0, 0, 1, 1], [], []>} : vector<8x8xf32>, vector<8x768xf32>, vector<8x768xf32> -> vector<8x768xf32>
    %c18_i32_23 = arith.constant 18 : i32
    %68 = tpu.dynamic_rotate %59 by %c18_i32_23 dim 1 : vector<8x768xf32>, i32 -> vector<8x768xf32>
    %69 = vector.extract_strided_slice %63 {offsets = [0, 8], sizes = [8, 8], strides = [1, 1]} : vector<8x72xf32> to vector<8x8xf32>
    %cst_24 = arith.constant dense<0.000000e+00> : vector<8x768xf32>
    %70 = tpu.matmul %69, %68, %cst_24 {dimension_numbers = #tpu.dot_dimension_numbers<[1], [0], [0], [1], [0, 0, 1, 1], [], []>} : vector<8x8xf32>, vector<8x768xf32>, vector<8x768xf32> -> vector<8x768xf32>
    %71 = arith.addf %67, %70 : vector<8x768xf32>
    %c17_i32_25 = arith.constant 17 : i32
    %72 = tpu.dynamic_rotate %59 by %c17_i32_25 dim 1 : vector<8x768xf32>, i32 -> vector<8x768xf32>
    %73 = vector.extract_strided_slice %63 {offsets = [0, 16], sizes = [8, 8], strides = [1, 1]} : vector<8x72xf32> to vector<8x8xf32>
    %cst_26 = arith.constant dense<0.000000e+00> : vector<8x768xf32>
    %74 = tpu.matmul %73, %72, %cst_26 {dimension_numbers = #tpu.dot_dimension_numbers<[1], [0], [0], [1], [0, 0, 1, 1], [], []>} : vector<8x8xf32>, vector<8x768xf32>, vector<8x768xf32> -> vector<8x768xf32>
    %75 = arith.addf %71, %74 : vector<8x768xf32>
    %c1_i32_27 = arith.constant 1 : i32
    %76 = tpu.dynamic_rotate %59 by %c1_i32_27 dim 1 : vector<8x768xf32>, i32 -> vector<8x768xf32>
    %77 = vector.extract_strided_slice %63 {offsets = [0, 24], sizes = [8, 8], strides = [1, 1]} : vector<8x72xf32> to vector<8x8xf32>
    %cst_28 = arith.constant dense<0.000000e+00> : vector<8x768xf32>
    %78 = tpu.matmul %77, %76, %cst_28 {dimension_numbers = #tpu.dot_dimension_numbers<[1], [0], [0], [1], [0, 0, 1, 1], [], []>} : vector<8x8xf32>, vector<8x768xf32>, vector<8x768xf32> -> vector<8x768xf32>
    %79 = arith.addf %75, %78 : vector<8x768xf32>
    %80 = vector.extract_strided_slice %63 {offsets = [0, 32], sizes = [8, 8], strides = [1, 1]} : vector<8x72xf32> to vector<8x8xf32>
    %cst_29 = arith.constant dense<0.000000e+00> : vector<8x768xf32>
    %81 = tpu.matmul %80, %59, %cst_29 {dimension_numbers = #tpu.dot_dimension_numbers<[1], [0], [0], [1], [0, 0, 1, 1], [], []>} : vector<8x8xf32>, vector<8x768xf32>, vector<8x768xf32> -> vector<8x768xf32>
    %82 = arith.addf %79, %81 : vector<8x768xf32>
    %c767_i32_30 = arith.constant 767 : i32
    %83 = tpu.dynamic_rotate %59 by %c767_i32_30 dim 1 : vector<8x768xf32>, i32 -> vector<8x768xf32>
    %84 = vector.extract_strided_slice %63 {offsets = [0, 40], sizes = [8, 8], strides = [1, 1]} : vector<8x72xf32> to vector<8x8xf32>
    %cst_31 = arith.constant dense<0.000000e+00> : vector<8x768xf32>
    %85 = tpu.matmul %84, %83, %cst_31 {dimension_numbers = #tpu.dot_dimension_numbers<[1], [0], [0], [1], [0, 0, 1, 1], [], []>} : vector<8x8xf32>, vector<8x768xf32>, vector<8x768xf32> -> vector<8x768xf32>
    %86 = arith.addf %82, %85 : vector<8x768xf32>
    %c751_i32_32 = arith.constant 751 : i32
    %87 = tpu.dynamic_rotate %59 by %c751_i32_32 dim 1 : vector<8x768xf32>, i32 -> vector<8x768xf32>
    %88 = vector.extract_strided_slice %63 {offsets = [0, 48], sizes = [8, 8], strides = [1, 1]} : vector<8x72xf32> to vector<8x8xf32>
    %cst_33 = arith.constant dense<0.000000e+00> : vector<8x768xf32>
    %89 = tpu.matmul %88, %87, %cst_33 {dimension_numbers = #tpu.dot_dimension_numbers<[1], [0], [0], [1], [0, 0, 1, 1], [], []>} : vector<8x8xf32>, vector<8x768xf32>, vector<8x768xf32> -> vector<8x768xf32>
    %90 = arith.addf %86, %89 : vector<8x768xf32>
    %c750_i32_34 = arith.constant 750 : i32
    %91 = tpu.dynamic_rotate %59 by %c750_i32_34 dim 1 : vector<8x768xf32>, i32 -> vector<8x768xf32>
    %92 = vector.extract_strided_slice %63 {offsets = [0, 56], sizes = [8, 8], strides = [1, 1]} : vector<8x72xf32> to vector<8x8xf32>
    %cst_35 = arith.constant dense<0.000000e+00> : vector<8x768xf32>
    %93 = tpu.matmul %92, %91, %cst_35 {dimension_numbers = #tpu.dot_dimension_numbers<[1], [0], [0], [1], [0, 0, 1, 1], [], []>} : vector<8x8xf32>, vector<8x768xf32>, vector<8x768xf32> -> vector<8x768xf32>
    %94 = arith.addf %90, %93 : vector<8x768xf32>
    %c749_i32_36 = arith.constant 749 : i32
    %95 = tpu.dynamic_rotate %59 by %c749_i32_36 dim 1 : vector<8x768xf32>, i32 -> vector<8x768xf32>
    %96 = vector.extract_strided_slice %63 {offsets = [0, 64], sizes = [8, 8], strides = [1, 1]} : vector<8x72xf32> to vector<8x8xf32>
    %cst_37 = arith.constant dense<0.000000e+00> : vector<8x768xf32>
    %97 = tpu.matmul %96, %95, %cst_37 {dimension_numbers = #tpu.dot_dimension_numbers<[1], [0], [0], [1], [0, 0, 1, 1], [], []>} : vector<8x8xf32>, vector<8x768xf32>, vector<8x768xf32> -> vector<8x768xf32>
    %98 = arith.addf %94, %97 : vector<8x768xf32>
    %99 = vector.broadcast %64 : vector<8x1xf32> to vector<8x768xf32>
    %100 = arith.addf %98, %99 : vector<8x768xf32>
    %cst_38 = arith.constant 0.000000e+00 : f32
    %101 = vector.broadcast %cst_38 : f32 to vector<8x768xf32>
    %102 = arith.maximumf %100, %101 : vector<8x768xf32>
    %103 = vector.extract_strided_slice %2 {offsets = [16, 0], sizes = [8, 16], strides = [1, 1]} : vector<24x16xf32> to vector<8x16xf32>
    %104 = vector.extract_strided_slice %103 {offsets = [0, 0], sizes = [8, 4], strides = [1, 1]} : vector<8x16xf32> to vector<8x4xf32>
    %cst_39 = arith.constant dense<0.000000e+00> : vector<8x768xf32>
    %105 = tpu.matmul %104, %16, %cst_39 {dimension_numbers = #tpu.dot_dimension_numbers<[1], [0], [0], [1], [0, 0, 1, 1], [], []>} : vector<8x4xf32>, vector<4x768xf32>, vector<8x768xf32> -> vector<8x768xf32>
    %106 = vector.extract_strided_slice %103 {offsets = [0, 4], sizes = [8, 4], strides = [1, 1]} : vector<8x16xf32> to vector<8x4xf32>
    %cst_40 = arith.constant dense<0.000000e+00> : vector<8x768xf32>
    %107 = tpu.matmul %106, %62, %cst_40 {dimension_numbers = #tpu.dot_dimension_numbers<[1], [0], [0], [1], [0, 0, 1, 1], [], []>} : vector<8x4xf32>, vector<4x768xf32>, vector<8x768xf32> -> vector<8x768xf32>
    %108 = arith.addf %105, %107 : vector<8x768xf32>
    %109 = vector.extract_strided_slice %103 {offsets = [0, 8], sizes = [8, 8], strides = [1, 1]} : vector<8x16xf32> to vector<8x8xf32>
    %cst_41 = arith.constant dense<0.000000e+00> : vector<8x768xf32>
    %110 = tpu.matmul %109, %102, %cst_41 {dimension_numbers = #tpu.dot_dimension_numbers<[1], [0], [0], [1], [0, 0, 1, 1], [], []>} : vector<8x8xf32>, vector<8x768xf32>, vector<8x768xf32> -> vector<8x768xf32>
    %111 = arith.addf %108, %110 : vector<8x768xf32>
    %cst_42 = arith.constant 1.000000e+00 : f32
    %112 = vector.broadcast %cst_42 : f32 to vector<8x768xf32>
    %113 = arith.mulf %112, %111 : vector<8x768xf32>
    %114 = arith.addf %113, %12 : vector<8x768xf32>
    %115 = vector.extract_strided_slice %4 {offsets = [40, 0], sizes = [8, 1], strides = [1, 1]} : vector<48x1xf32> to vector<8x1xf32>
    %116 = vector.broadcast %115 : vector<8x1xf32> to vector<8x768xf32>
    %117 = arith.addf %114, %116 : vector<8x768xf32>
    %cst_43 = arith.constant 0.000000e+00 : f32
    %118 = vector.broadcast %cst_43 : f32 to vector<8x768xf32>
    %119 = arith.maximumf %117, %118 : vector<8x768xf32>
    %c0_44 = arith.constant 0 : index
    %c0_45 = arith.constant 0 : index
    %120 = vector.load %arg6[%c0_44, %c0_45] : memref<8x768xf32, #tpu.memory_space<vmem>>, vector<8x768xf32>
    tpu.vector_store %arg6[%c0_44, %c0_45], %119 {strides = array<i32>} : memref<8x768xf32, #tpu.memory_space<vmem>>, vector<8x768xf32>,
    return
  }
  func.func @transform_0(%arg0: i32) -> (i32, i32) {
    %c0_i32 = arith.constant 0 : i32
    %c0_i32_0 = arith.constant 0 : i32
    %c0_i32_1 = arith.constant 0 : i32
    return %c0_i32, %c0_i32_0 : i32, i32
  }
  func.func @transform_1(%arg0: i32) -> (i32, i32) {
    %c0_i32 = arith.constant 0 : i32
    %c0_i32_0 = arith.constant 0 : i32
    %c0_i32_1 = arith.constant 0 : i32
    return %c0_i32, %c0_i32_0 : i32, i32
  }
  func.func @transform_2(%arg0: i32) -> (i32, i32) {
    %c0_i32 = arith.constant 0 : i32
    %c0_i32_0 = arith.constant 0 : i32
    %c0_i32_1 = arith.constant 0 : i32
    return %c0_i32, %c0_i32_0 : i32, i32
  }
  func.func @transform_3(%arg0: i32) -> (i32, i32) {
    %c0_i32 = arith.constant 0 : i32
    %c0_i32_0 = arith.constant 0 : i32
    %c0_i32_1 = arith.constant 0 : i32
    return %c0_i32, %c0_i32_0 : i32, i32
  }
  func.func @transform_4(%arg0: i32) -> (i32, i32) {
    %c0_i32 = arith.constant 0 : i32
    %c0_i32_0 = arith.constant 0 : i32
    %c0_i32_1 = arith.constant 0 : i32
    return %c0_i32, %c0_i32_0 : i32, i32
  }
  func.func @transform_5(%arg0: i32) -> (i32, i32) {
    %c0_i32 = arith.constant 0 : i32
    %c0_i32_0 = arith.constant 0 : i32
    %c0_i32_1 = arith.constant 0 : i32
    return %c0_i32, %c0_i32_0 : i32, i32
  }
}

</mosaic_0001>

<bundles_post_ra>
// kernel: inception_forward.1
= control target key start
LH: loop header
LB: loop body
LE: loop exit
PB: predicated region body
PF: predicated region fallthrough
CT: control target
= control target key end

     0   :  { %v5993_v3 = vmov 0.0   ;;  %v5994_v4 = vmov 0   ;;  %vm45_vm0 = vcmask 130048   ;;  %v339_v24 = vlaneseq  ;;  %s5996_s28 = smov 120   ;;  %s5997_s6 = smov 19   ;;  %s7034_s0 = inlined_call_operand.vmem [shape: f32[16,768], index: 0, kind: input, shape index: {}]   ;;  %s7035_s2 = inlined_call_operand.vmem [shape: f32[24,16], index: 2, kind: input, shape index: {}]   ;;  %s7036_s4 = inlined_call_operand.vmem [shape: f32[48,1], index: 4, kind: input, shape index: {}]   ;;  %s7037_s1 = inlined_call_operand.vmem [shape: f32[1,768], index: 1, kind: input, shape index: {}]   ;;  %s7038_s3 = inlined_call_operand.vmem [shape: f32[24,72], index: 3, kind: input, shape index: {}]   ;;  %s7039_s5 = inlined_call_operand.vmem [shape: f32[8,768], index: 5, kind: output, shape index: {}]  }
   0x1   :  { %v21_v0 = vld [vmem:[%s7034_s0 + $0x8] sm:$0xff]  ;;  %v27_v1 = vld [vmem:[%s7034_s0 + $0x38] sm:$0xff]  ;;  %v20_v2 = vld [vmem:[%s7034_s0] sm:$0xff]  ;;  %119 = vmatprep.mubr.f32.mxu1 %v5993_v3  ;;  %5990 = vset.pattern.permute.xlu0 %v5994_v4  ;;  %s5998_s7 = smov 17   ;;  %s5999_s8 = smov 112   ;;  %vm421_vm2 = vcmask 64512  }
   0x2   :  { %v5795_v5 = vpack.c.bf16 %v27_v1, %v21_v0  ;;  %v26_v6 = vld [vmem:[%s7034_s0 + $0x30] sm:$0xff]  ;;  %644 = vmatprep.mubr.f32.mxu0 %v5993_v3  ;;  %5991 = vset.pattern.permute.xlu1 %v5994_v4  ;;  %v23_v8 = vld [vmem:[%s7034_s0 + $0x18] sm:$0xff]  ;;  %v29_v9 = vld [vmem:[%s7034_s0 + $0x48] sm:$0xff]  ;;  %v340_v25 = vshrl.u32 %v339_v24, 7  ;;  %s6000_s9 = smov 1   ;;  %s6001_s10 = smov 104  }
   0x3   :  { %v5797_v7 = vpack.c.bf16 %v26_v6, %v20_v2  ;;  %v5799_v10 = vpack.c.bf16 %v29_v9, %v23_v8  ;;  %v22_v11 = vld [vmem:[%s7034_s0 + $0x10] sm:$0xff]  ;;  %v28_v12 = vld [vmem:[%s7034_s0 + $0x40] sm:$0xff]  ;;  %v25_v13 = vld [vmem:[%s7034_s0 + $0x28] sm:$0xff]  ;;  %s6002_s11 = smov 96   ;;  %s6003_s12 = smov 127   ;;  %v6261_v9 = vand.u32 127, %v339_v24 }
   0x4   :  { %5796 = vmatprep.subr.bf16.mxu1 %v5795_v5  ;;  %v33_v14 = vld [vmem:[%s7035_s2] sm:$0xff]  ;;  %v5801_v15 = vpack.c.bf16 %v28_v12, %v22_v11  ;;  %v31_v16 = vld [vmem:[%s7034_s0 + $0x58] sm:$0xff]  ;;  %v34_v19 = vld [vmem:[%s7035_s2 + $0x8] sm:$0xff]  ;;  %v341_v26 = vsub.s32 0, %v340_v25  ;;  %v345_v29 = vsub.s32 1, %v340_v25  ;;  %v349_v45 = vsub.s32 2, %v340_v25 }
   0x5   :  { %5798 = vmatpush1.bf16.msra.mxu1 %v5797_v7  ;;  %v5803_v17 = vpack.c.bf16 %v31_v16, %v25_v13  ;;  %v39_v18 = vld [vmem:[%s7036_s4] sm:$0xff]  ;;  %v35_v20 = vld [vmem:[%s7035_s2 + $0x10] sm:$0xff]  ;;  %v357_v54 = vsub.s32 4, %v340_v25  ;;  %v361_v55 = vsub.s32 5, %v340_v25  ;;  %v353_v2 = vsub.s32 3, %v340_v25  ;;  %v6171_v5 = vld [vmem:[%s7038_s3 + $0x8] sm:$0xff] }
   0x6   :  { %5800 = vmatprep.subr.bf16.mxu1 %v5799_v10  ;;  %306 = vperm.xlu0 %5990, %v39_v18   ;;  %v24_v21 = vld [vmem:[%s7034_s0 + $0x20] sm:$0xff]  ;;  %v30_v22 = vld [vmem:[%s7034_s0 + $0x50] sm:$0xff]  ;;  %s6004_s13 = smov 88   ;;  %s6005_s14 = smov 111   ;;  %vm408_vm1 = vcmp.lt.s32.totalorder %v6261_v9, 18  ;;  %vm389_vm3 = vcmp.lt.s32.totalorder %v6261_v9, 19 }
   0x7   :  { %v5805_v23 = vpack.c.bf16 %v30_v22, %v24_v21  ;;  %v32_v28 = vld [vmem:[%s7037_s1] sm:$0x3f]  ;;  %s5995_s1 = smov 18   ;;  %s6006_s15 = smov 80   ;;  %vm904_vm4 = vcmp.lt.s32.totalorder %v6261_v9, 17  ;;  %vm1174_vm5 = vcmp.lt.s32.totalorder %v6261_v9, 1 }
   0x8   :  { %5684 = vmatmul.mubr.msk.f32.vlgmr.msra.gmra.mrb[0].mxu1 %vm45_vm0, %v33_v14  ;;  %v6114_v32 = vrot.slane %v32_v28, %v341_v26  ;;  %v6116_v35 = vrot.slane %v32_v28, %v345_v29  ;;  %v6137_v43 = vld [vmem:[%s7038_s3] sm:$0xff]  ;;  %v6143_v48 = vrot.slane %v32_v28, %v349_v45  ;;  %v6154_v58 = vrot.slane %v32_v28, %v357_v54  ;;  %s6007_s16 = smov 110   ;;  %s6008_s17 = smov 109  }
   0x9   :  { %125 = vmatprep.mubr.f32.mxu1 %v5993_v3  ;;  %5802 = vmatpush1.bf16.msra.mxu1 %v5801_v15  ;;  %v6156_v61 = vrot.slane %v32_v28, %v361_v55  ;;  %v6173_v7 = vrot.slane %v32_v28, %v353_v2  ;;  %s6009_s18 = smov 72   ;;  %s6010_s19 = smov 64   ;;  %vm1695_vm6 = vcmp.lt.s32.totalorder %v6261_v9, 127  ;;  %vm1965_vm7 = vcmp.lt.s32.totalorder %v6261_v9, 111 }
   0xa   :  { %5804 = vmatprep.subr.bf16.mxu1 %v5803_v17  ;;  %vm2235_vm8 = vcmp.lt.s32.totalorder %v6261_v9, 110  ;;  %vm2505_vm9 = vcmp.lt.s32.totalorder %v6261_v9, 109  ;;  %s6011_s30 = smov 124   ;;  %vm4963_vm10 = vcmask 1043456   ;;  %vm4960_vm11 = vcmask 31744  }
   0xc   :  { %5685 = vmatmul.mubr.msk.f32.gmra.mrb[2].mxu1 %vm45_vm0, %v34_v19 }
   0xd   :  { %131 = vmatprep.mubr.f32.mxu1 %v5993_v3 }
  0x10   :  { %5686 = vmatmul.mubr.msk.f32.gmra.mrb[4].mxu1 %vm45_vm0, %v35_v20 }
  0x11   :  { %202 = vmatprep.mubr.f32.mxu1 %v5993_v3 }
  0x14   :  { %5687 = vmatmul.mubr.msk.f32.vlgmr.msra.gmra.mrb[6].mxu1 %vm45_vm0, %v33_v14 }
  0x15   :  { %208 = vmatprep.mubr.f32.mxu1 %v5993_v3  ;;  %5806 = vmatpush1.bf16.msra.mxu1 %v5805_v23 }
  0x18   :  { %5688 = vmatmul.mubr.msk.f32.gmra.mrb[8].mxu1 %vm45_vm0, %v34_v19 }
  0x19   :  { %214 = vmatprep.mubr.f32.mxu1 %v5993_v3 }
  0x1c   :  { %5689 = vmatmul.mubr.msk.f32.gmra.mrb[10].mxu1 %vm45_vm0, %v35_v20 }
  0x1d   :  { %285 = vmatprep.mubr.f32.mxu1 %v5993_v3 }
  0x20   :  { %5690 = vmatmul.mubr.msk.f32.vlgmr.msra.gmra.mrb[12].mxu1 %vm45_vm0, %v33_v14 }
  0x21   :  { %291 = vmatprep.mubr.f32.mxu1 %v5993_v3 }
  0x24   :  { %5691 = vmatmul.mubr.msk.f32.gmra.mrb[14].mxu1 %vm45_vm0, %v34_v19 }
  0x25   :  { %297 = vmatprep.mubr.f32.mxu1 %v5993_v3 }
  0x28   :  { %5692 = vmatmul.mubr.msk.f32.gmra.mrb[16].mxu1 %vm45_vm0, %v35_v20 }
  0x29   :  { %490 = vmatprep.mubr.f32.mxu1 %v5993_v3 }
  0x85   :  { %v307_v27 = vpop.permute.xlu0 %306 }
  0xdb   :  { %v121_v30 = vpop.f32.mrb[0].mxu1 }
  0xdc   :  { %v314_v31 = vadd.f32 %v307_v27, %v121_v30  ;;  %v123_v33 = vpop.f32.mrb[1].mxu1 }
  0xdd   :  { %v315_v34 = vadd.f32 %v307_v27, %v123_v33 }
  0xde   :  { %v326_v36 = vmax.f32 %v314_v31, 0.0 }
  0xdf   :  { %v327_v37 = vmax.f32 %v315_v34, 0.0  ;;  %v6118_v38 = vpop.f32.mrb[2].mxu1 }
  0xe0   :  { %v6121_v39 = vmul.f32 %v6114_v32, %v326_v36  ;;  %v6123_v40 = vpop.f32.mrb[3].mxu1  ;;  %v41_v36 = vld [vmem:[%s7036_s4 + $0x10] sm:$0xff] }
  0xe1   :  { %v6126_v41 = vmul.f32 %v6116_v35, %v327_v37 }
  0xe2   :  { %396 = vrot.lane.b32.xlu0 %v6121_v39, %s5995_s1 }
  0xe3   :  { %398 = vrot.lane.b32.xlu1 %v6126_v41, %s5995_s1  ;;  %v6132_v42 = vpop.f32.mrb[4].mxu1 }
  0xe4   :  { %v6139_v44 = vpop.f32.mrb[5].mxu1 }
  0xe6   :  { %417 = vrot.lane.b32.xlu0 %v6137_v43, %s5996_s28 }
  0xe7   :  { %v204_v46 = vpop.f32.mrb[6].mxu1 }
  0xe8   :  { %v316_v47 = vadd.f32 %v307_v27, %v204_v46  ;;  %v206_v49 = vpop.f32.mrb[7].mxu1 }
  0xe9   :  { %v317_v1 = vadd.f32 %v307_v27, %v206_v49 }
  0xea   :  { %v328_v50 = vmax.f32 %v316_v47, 0.0 }
  0xeb   :  { %v6145_v51 = vpop.f32.mrb[8].mxu1  ;;  %v329_v6 = vmax.f32 %v317_v1, 0.0 }
  0xec   :  { %v6148_v52 = vmul.f32 %v6143_v48, %v328_v50  ;;  %v6150_v53 = vpop.f32.mrb[9].mxu1 }
  0xed   :  { %v6180_v8 = vmul.f32 %v6173_v7, %v329_v6 }
  0xee   :  { %400 = vrot.lane.b32.xlu0 %v6148_v52, %s5995_s1 }
  0xf3   :  { %v287_v56 = vpop.f32.mrb[12].mxu1 }
  0xf4   :  { %v318_v57 = vadd.f32 %v307_v27, %v287_v56  ;;  %v289_v59 = vpop.f32.mrb[13].mxu1 }
  0xf5   :  { %v319_v60 = vadd.f32 %v307_v27, %v289_v59 }
  0xf6   :  { %v330_v62 = vmax.f32 %v318_v57, 0.0 }
  0xf7   :  { %v331_v63 = vmax.f32 %v319_v60, 0.0  ;;  %v6333_v37 = vpop.f32.mrb[14].mxu1 }
  0xf8   :  { %v6159_v0 = vmul.f32 %v6154_v58, %v330_v62  ;;  %v6338_v46 = vpop.f32.mrb[15].mxu1 }
  0xf9   :  { %v6162_v4 = vmul.f32 %v6156_v61, %v331_v63 }
  0xfa   :  { %404 = vrot.lane.b32.xlu0 %v6159_v0, %s5995_s1 }
  0xfb   :  { %406 = vrot.lane.b32.xlu1 %v6162_v4, %s5995_s1  ;;  %v6340_v47 = vpop.f32.mrb[16].mxu1 }
  0xfc   :  { %v6344_v50 = vpop.f32.mrb[17].mxu1 }
  0xfe   :  { %377 = vrot.lane.b32.xlu0 %v6126_v41, %s5997_s6 }
  0xff   :  { %419 = vrot.lane.b32.xlu1 %v6171_v5, %s5996_s28 }
 0x102   :  { %379 = vrot.lane.b32.xlu0 %v6148_v52, %s5997_s6 }
 0x103   :  { %402 = vrot.lane.b32.xlu1 %v6180_v8, %s5995_s1 }
 0x106   :  { %892 = vrot.lane.b32.xlu0 %v6121_v39, %s5998_s7 }
 0x107   :  { %375 = vrot.lane.b32.xlu1 %v6121_v39, %s5997_s6 }
 0x10a   :  { %902 = vrot.lane.b32.xlu0 %v6162_v4, %s5998_s7 }
 0x10b   :  { %385 = vrot.lane.b32.xlu1 %v6162_v4, %s5997_s6 }
 0x10e   :  { %913 = vrot.lane.b32.xlu0 %v6171_v5, %s5999_s8 }
 0x10f   :  { %381 = vrot.lane.b32.xlu1 %v6180_v8, %s5997_s6 }
 0x112   :  { %898 = vrot.lane.b32.xlu0 %v6180_v8, %s5998_s7 }
 0x113   :  { %894 = vrot.lane.b32.xlu1 %v6126_v41, %s5998_s7 }
 0x116   :  { %1164 = vrot.lane.b32.xlu0 %v6126_v41, %s6000_s9 }
 0x117   :  { %911 = vrot.lane.b32.xlu1 %v6137_v43, %s5999_s8 }
 0x11a   :  { %1181 = vrot.lane.b32.xlu0 %v6137_v43, %s6001_s10 }
 0x11b   :  { %896 = vrot.lane.b32.xlu1 %v6148_v52, %s5998_s7 }
 0x11e   :  { %1166 = vrot.lane.b32.xlu0 %v6148_v52, %s6000_s9 }
 0x11f   :  { %1162 = vrot.lane.b32.xlu1 %v6121_v39, %s6000_s9 }
 0x122   :  { %1432 = vrot.lane.b32.xlu0 %v6137_v43, %s6002_s11 }
 0x123   :  { %1172 = vrot.lane.b32.xlu1 %v6162_v4, %s6000_s9 }
 0x126   :  { %383 = vrot.lane.b32.xlu0 %v6159_v0, %s5997_s6 }
 0x127   :  { %1183 = vrot.lane.b32.xlu1 %v6171_v5, %s6001_s10 }
 0x12a   :  { %1687 = vrot.lane.b32.xlu0 %v6148_v52, %s6003_s12 }
 0x12b   :  { %1168 = vrot.lane.b32.xlu1 %v6180_v8, %s6000_s9 }
 0x12e   :  { %1702 = vrot.lane.b32.xlu0 %v6137_v43, %s6004_s13 }
 0x12f   :  { %1434 = vrot.lane.b32.xlu1 %v6171_v5, %s6002_s11 }
 0x132   :  { %1704 = vrot.lane.b32.xlu0 %v6171_v5, %s6004_s13 }
 0x133   :  { %1685 = vrot.lane.b32.xlu1 %v6126_v41, %s6003_s12 }
 0x136   :  { %1691 = vrot.lane.b32.xlu0 %v6159_v0, %s6003_s12 }
 0x137   :  { %1683 = vrot.lane.b32.xlu1 %v6121_v39, %s6003_s12 }
 0x13a   :  { %1955 = vrot.lane.b32.xlu0 %v6126_v41, %s6005_s14 }
 0x13b   :  { %900 = vrot.lane.b32.xlu1 %v6159_v0, %s5998_s7 }
 0x13e   :  { %1953 = vrot.lane.b32.xlu0 %v6121_v39, %s6005_s14 }
 0x13f   :  { %1689 = vrot.lane.b32.xlu1 %v6180_v8, %s6003_s12 }
 0x142   :  { %1974 = vrot.lane.b32.xlu0 %v6171_v5, %s6006_s15 }
 0x143   :  { %1170 = vrot.lane.b32.xlu1 %v6159_v0, %s6000_s9 }
 0x146   :  { %1961 = vrot.lane.b32.xlu0 %v6159_v0, %s6005_s14 }
 0x147   :  { %1957 = vrot.lane.b32.xlu1 %v6148_v52, %s6005_s14 }
 0x14a   :  { %2225 = vrot.lane.b32.xlu0 %v6126_v41, %s6007_s16 }
 0x14b   :  { %1972 = vrot.lane.b32.xlu1 %v6137_v43, %s6006_s15 }
 0x14e   :  { %2223 = vrot.lane.b32.xlu0 %v6121_v39, %s6007_s16 }
 0x14f   :  { %1959 = vrot.lane.b32.xlu1 %v6180_v8, %s6005_s14 }
 0x152   :  { %2229 = vrot.lane.b32.xlu0 %v6180_v8, %s6007_s16 }
 0x153   :  { %2227 = vrot.lane.b32.xlu1 %v6148_v52, %s6007_s16 }
 0x154   :  { %v397_v10 = vpop.permute.xlu0 %396 }
 0x155   :  { %v399_v11 = vpop.permute.xlu1 %398 }
 0x156   :  { %1963 = vrot.lane.b32.xlu0 %v6162_v4, %s6005_s14  ;;  %v413_v12 = vsel %vm408_vm1, %v397_v10, %v399_v11 }
 0x157   :  { %426 = vmatprep.subr.mxu1 %v413_v12  ;;  %1693 = vrot.lane.b32.xlu1 %v6162_v4, %s6003_s12 }
 0x158   :  { %v418_v13 = vpop.permute.xlu0 %417 }
 0x15a   :  { %2497 = vrot.lane.b32.xlu0 %v6148_v52, %s6008_s17 }
 0x15b   :  { %2242 = vrot.lane.b32.xlu1 %v6137_v43, %s6009_s18 }
 0x15e   :  { %2233 = vrot.lane.b32.xlu0 %v6162_v4, %s6007_s16 }
 0x15f   :  { %2244 = vrot.lane.b32.xlu1 %v6171_v5, %s6009_s18 }
 0x160   :  { %v401_v14 = vpop.permute.xlu0 %400 }
 0x161   :  { %v412_v25 = vsel %vm408_vm1, %v399_v11, %v401_v14 }
 0x162   :  { %2512 = vrot.lane.b32.xlu0 %v6137_v43, %s6010_s19 }
 0x163   :  { %2231 = vrot.lane.b32.xlu1 %v6159_v0, %s6007_s16 }
 0x166   :  { %2501 = vrot.lane.b32.xlu0 %v6159_v0, %s6008_s17 }
 0x167   :  { %2495 = vrot.lane.b32.xlu1 %v6126_v41, %s6008_s17 }
 0x16a   :  { %2499 = vrot.lane.b32.xlu0 %v6180_v8, %s6008_s17 }
 0x16b   :  { %2493 = vrot.lane.b32.xlu1 %v6121_v39, %s6008_s17 }
 0x16c   :  { %v405_v15 = vpop.permute.xlu0 %404 }
 0x16d   :  { %v407_v16 = vpop.permute.xlu1 %406 }
 0x16e   :  { %v414_v17 = vsel %vm408_vm1, %v407_v16, %v397_v10  ;;  %v409_v18 = vsel %vm408_vm1, %v405_v15, %v407_v16 }
 0x16f   :  { %2503 = vrot.lane.b32.xlu1 %v6162_v4, %s6008_s17  ;;  %427 = vmatpush1.msra.mxu1 %v414_v17 }
 0x170   :  { %580 = vmatprep.subr.mxu0 %v409_v18  ;;  %v378_v19 = vpop.permute.xlu0 %377  ;;  %5693 = vmatmul.mubr.msk.f32.vlgmr.msra.gmra.mrb[18].mxu1 %vm421_vm2, %v418_v13 }
 0x171   :  { %v420_v20 = vpop.permute.xlu1 %419  ;;  %496 = vmatprep.mubr.f32.mxu1 %v5993_v3 }
 0x173   :  { %2514 = vrot.lane.b32.xlu1 %v6171_v5, %s6010_s19 }
 0x174   :  { %v380_v21 = vpop.permute.xlu0 %379  ;;  %5694 = vmatmul.mubr.msk.f32.gmra.mrb[20].mxu1 %vm421_vm2, %v420_v20 }
 0x175   :  { %v403_v22 = vpop.permute.xlu1 %402  ;;  %567 = vmatprep.mubr.f32.mxu1 %v5993_v3  ;;  %v393_v54 = vsel %vm389_vm3, %v378_v19, %v380_v21 }
 0x176   :  { %v411_v23 = vsel %vm408_vm1, %v401_v14, %v403_v22  ;;  %v410_v24 = vsel %vm408_vm1, %v403_v22, %v405_v15 }
 0x177   :  { %503 = vmatprep.subr.mxu1 %v411_v23  ;;  %581 = vmatpush1.msra.mxu0 %v410_v24 }
 0x178   :  { %v893_v26 = vpop.permute.xlu0 %892  ;;  %504 = vmatpush1.msra.mxu1 %v412_v25  ;;  %5697 = vmatmul.mubr.msk.f32.vlgmr.msra.gmra.mrb[0].mxu0 %vm421_vm2, %v418_v13 }
 0x179   :  { %5695 = vmatmul.mubr.msk.f32.vlgmr.msra.gmra.mrb[22].mxu1 %vm421_vm2, %v418_v13  ;;  %5807 = vmatprep.subr.mxu1 %v409_v18  ;;  %v376_v27 = vpop.permute.xlu1 %375 }
 0x17a   :  { %5808 = vmatpush1.msra.mxu1 %v410_v24  ;;  %v394_v28 = vsel %vm389_vm3, %v376_v27, %v378_v19  ;;  %573 = vmatprep.mubr.f32.mxu1 %v5993_v3 }
 0x17b   :  { %661 = vmatprep.subr.mxu1 %v394_v28  ;;  %879 = vmatprep.mubr.f32.mxu0 %v5993_v3 }
 0x17c   :  { %v6321_v29 = vpop.permute.xlu0 %902  ;;  %2765 = vperm.xlu1 %5991, %v41_v36  }
 0x17d   :  { %5696 = vmatmul.mubr.msk.f32.gmra.mrb[24].mxu1 %vm421_vm2, %v420_v20  ;;  %v386_v30 = vpop.permute.xlu1 %385  ;;  %v910_v62 = vsel %vm904_vm4, %v6321_v29, %v893_v26 }
 0x17e   :  { %650 = vmatprep.mubr.f32.mxu1 %v5993_v3  ;;  %v395_v33 = vsel %vm389_vm3, %v386_v30, %v376_v27 }
 0x180   :  { %v6325_v31 = vpop.permute.xlu0 %913 }
 0x181   :  { %5698 = vmatmul.mubr.msk.f32.vlgmr.msra.gmra.mrb[26].mxu1 %vm421_vm2, %v420_v20  ;;  %v382_v34 = vpop.permute.xlu1 %381 }
 0x182   :  { %662 = vmatpush1.msra.mxu1 %v395_v33  ;;  %v392_v45 = vsel %vm389_vm3, %v380_v21, %v382_v34  ;;  %725 = vmatprep.mubr.f32.mxu1 %v5993_v3 }
 0x183   :  { %738 = vmatprep.subr.mxu1 %v392_v45 }
 0x184   :  { %v6342_v49 = vpop.permute.xlu0 %898 }
 0x185   :  { %5699 = vmatmul.mubr.msk.f32.vlgmr.msra.gmra.mrb[18].mxu1 %vm421_vm2, %v6137_v43  ;;  %v895_v55 = vpop.permute.xlu1 %894 }
 0x186   :  { %739 = vmatpush1.msra.mxu1 %v393_v54  ;;  %v909_v56 = vsel %vm904_vm4, %v893_v26, %v895_v55  ;;  %731 = vmatprep.mubr.f32.mxu1 %v5993_v3 }
 0x187   :  { %919 = vmatprep.subr.mxu1 %v909_v56 }
 0x188   :  { %v1165_v57 = vpop.permute.xlu0 %1164 }
 0x189   :  { %5700 = vmatmul.mubr.msk.f32.gmra.mrb[20].mxu1 %vm421_vm2, %v6171_v5  ;;  %v6356_v59 = vpop.permute.xlu1 %911 }
 0x18a   :  { %802 = vmatprep.mubr.f32.mxu1 %v5993_v3 }
 0x18c   :  { %v6359_v60 = vpop.permute.xlu0 %1181 }
 0x18d   :  { %5701 = vmatmul.mubr.msk.f32.vlgmr.msra.gmra.mrb[22].mxu1 %vm421_vm2, %v6137_v43  ;;  %v897_v63 = vpop.permute.xlu1 %896 }
 0x18e   :  { %920 = vmatpush1.msra.mxu1 %v910_v62  ;;  %v907_v1 = vsel %vm904_vm4, %v897_v63, %v6342_v49  ;;  %808 = vmatprep.mubr.f32.mxu1 %v5993_v3  ;;  %v908_v11 = vsel %vm904_vm4, %v895_v55, %v897_v63 }
 0x18f   :  { %996 = vmatprep.subr.mxu1 %v907_v1 }
 0x190   :  { %v1167_v2 = vpop.permute.xlu0 %1166 }
 0x191   :  { %5702 = vmatmul.mubr.msk.f32.gmra.mrb[24].mxu1 %vm421_vm2, %v6171_v5  ;;  %v1163_v6 = vpop.permute.xlu1 %1162  ;;  %v1178_v24 = vsel %vm1174_vm5, %v1165_v57, %v1167_v2 }
 0x192   :  { %983 = vmatprep.mubr.f32.mxu1 %v5993_v3  ;;  %v1179_v13 = vsel %vm1174_vm5, %v1163_v6, %v1165_v57 }
 0x194   :  { %v6374_v10 = vpop.permute.xlu0 %1432 }
 0x195   :  { %5705 = vmatmul.mubr.msk.f32.vlgmr.msra.gmra.mrb[18].mxu1 %vm421_vm2, %v6356_v59  ;;  %v6380_v12 = vpop.permute.xlu1 %1172 }
 0x196   :  { %997 = vmatpush1.msra.mxu1 %v908_v11  ;;  %989 = vmatprep.mubr.f32.mxu1 %v5993_v3  ;;  %v1180_v19 = vsel %vm1174_vm5, %v6380_v12, %v1163_v6 }
 0x197   :  { %1189 = vmatprep.subr.mxu1 %v1179_v13 }
 0x198   :  { %v384_v14 = vpop.permute.xlu0 %383 }
 0x199   :  { %v391_v15 = vsel %vm389_vm3, %v382_v34, %v384_v14  ;;  %5706 = vmatmul.mubr.msk.f32.gmra.mrb[20].mxu1 %vm421_vm2, %v6325_v31  ;;  %v6389_v16 = vpop.permute.xlu1 %1183  ;;  %v390_v17 = vsel %vm389_vm3, %v384_v14, %v386_v30 }
 0x19a   :  { %815 = vmatprep.subr.mxu0 %v390_v17  ;;  %1060 = vmatprep.mubr.f32.mxu1 %v5993_v3 }
 0x19b   :  { %816 = vmatpush1.msra.mxu0 %v391_v15 }
 0x19c   :  { %v6394_v18 = vpop.permute.xlu0 %1687  ;;  %5703 = vmatmul.mubr.msk.f32.vlgmr.msra.gmra.mrb[0].mxu0 %vm421_vm2, %v6137_v43 }
 0x19d   :  { %5707 = vmatmul.mubr.msk.f32.vlgmr.msra.gmra.mrb[22].mxu1 %vm421_vm2, %v6356_v59  ;;  %v1169_v20 = vpop.permute.xlu1 %1168  ;;  %885 = vmatprep.mubr.f32.mxu0 %v5993_v3 }
 0x19e   :  { %1190 = vmatpush1.msra.mxu1 %v1180_v19  ;;  %v1177_v21 = vsel %vm1174_vm5, %v1167_v2, %v1169_v20  ;;  %1066 = vmatprep.mubr.f32.mxu1 %v5993_v3 }
 0x19f   :  { %1266 = vmatprep.subr.mxu1 %v1177_v21 }
 0x1a0   :  { %v6407_v22 = vpop.permute.xlu0 %1702  ;;  %5704 = vmatmul.mubr.msk.f32.gmra.mrb[2].mxu0 %vm421_vm2, %v6171_v5 }
 0x1a1   :  { %5708 = vmatmul.mubr.msk.f32.gmra.mrb[24].mxu1 %vm421_vm2, %v6325_v31  ;;  %v6413_v43 = vpop.permute.xlu1 %1434  ;;  %1137 = vmatprep.mubr.f32.mxu0 %v5993_v3 }
 0x1a2   :  { %1253 = vmatprep.mubr.f32.mxu1 %v5993_v3 }
 0x1a4   :  { %v6417_v23 = vpop.permute.xlu0 %1704 }
 0x1a5   :  { %5711 = vmatmul.mubr.msk.f32.vlgmr.msra.gmra.mrb[18].mxu1 %vm421_vm2, %v6359_v60  ;;  %v1686_v25 = vpop.permute.xlu1 %1685 }
 0x1a6   :  { %1267 = vmatpush1.msra.mxu1 %v1178_v24  ;;  %1259 = vmatprep.mubr.f32.mxu1 %v5993_v3  ;;  %v1699_v36 = vsel %vm1695_vm6, %v1686_v25, %v6394_v18 }
 0x1a7   :  { %1440 = vmatprep.subr.mxu1 %v6126_v41 }
 0x1a8   :  { %v6425_v5 = vpop.permute.xlu0 %1691 }
 0x1a9   :  { %5712 = vmatmul.mubr.msk.f32.gmra.mrb[20].mxu1 %vm421_vm2, %v6389_v16  ;;  %v6429_v26 = vpop.permute.xlu1 %1683 }
 0x1aa   :  { %1330 = vmatprep.mubr.f32.mxu1 %v5993_v3  ;;  %v1700_v54 = vsel %vm1695_vm6, %v6429_v26, %v1686_v25 }
 0x1ac   :  { %v6432_v27 = vpop.permute.xlu0 %1955 }
 0x1ad   :  { %5713 = vmatmul.mubr.msk.f32.vlgmr.msra.gmra.mrb[22].mxu1 %vm421_vm2, %v6359_v60  ;;  %v901_v28 = vpop.permute.xlu1 %900 }
 0x1ae   :  { %1441 = vmatpush1.msra.mxu1 %v6121_v39  ;;  %v906_v41 = vsel %vm904_vm4, %v6342_v49, %v901_v28  ;;  %v905_v30 = vsel %vm904_vm4, %v901_v28, %v6321_v29  ;;  %1336 = vmatprep.mubr.f32.mxu1 %v5993_v3 }
 0x1af   :  { %1517 = vmatprep.subr.mxu1 %v6180_v8  ;;  %1073 = vmatprep.subr.mxu0 %v905_v30 }
 0x1b0   :  { %v6445_v33 = vpop.permute.xlu0 %1953  ;;  %1074 = vmatpush1.msra.mxu0 %v906_v41 }
 0x1b1   :  { %5709 = vmatmul.mubr.msk.f32.vlgmr.msra.gmra.mrb[0].mxu0 %vm421_vm2, %v6356_v59  ;;  %5714 = vmatmul.mubr.msk.f32.gmra.mrb[24].mxu1 %vm421_vm2, %v6389_v16  ;;  %v1690_v39 = vpop.permute.xlu1 %1689  ;;  %v1970_v11 = vsel %vm1965_vm7, %v6445_v33, %v6432_v27 }
 0x1b2   :  { %1143 = vmatprep.mubr.f32.mxu0 %v5993_v3  ;;  %1504 = vmatprep.mubr.f32.mxu1 %v5993_v3  ;;  %v1698_v59 = vsel %vm1695_vm6, %v6394_v18, %v1690_v39 }
 0x1b4   :  { %v6454_v29 = vpop.permute.xlu0 %1974 }
 0x1b5   :  { %5710 = vmatmul.mubr.msk.f32.gmra.mrb[2].mxu0 %vm421_vm2, %v6325_v31  ;;  %5717 = vmatmul.mubr.msk.f32.vlgmr.msra.gmra.mrb[18].mxu1 %vm421_vm2, %v6374_v10  ;;  %v1171_v8 = vpop.permute.xlu1 %1170 }
 0x1b6   :  { %1518 = vmatpush1.msra.mxu1 %v6148_v52  ;;  %v1176_v34 = vsel %vm1174_vm5, %v1169_v20, %v1171_v8  ;;  %v1175_v45 = vsel %vm1174_vm5, %v1171_v8, %v6380_v12  ;;  %1407 = vmatprep.mubr.f32.mxu0 %v5993_v3 }
 0x1b7   :  { %1710 = vmatprep.subr.mxu1 %v1699_v36  ;;  %1343 = vmatprep.subr.mxu0 %v1175_v45  ;;  %v6646_v45 = vld [vmem:[%s7038_s3 + $0x10] sm:$0xff] }
 0x1b8   :  { %v1962_v31 = vpop.permute.xlu0 %1961  ;;  %1344 = vmatpush1.msra.mxu0 %v1176_v34  ;;  %1510 = vmatprep.mubr.f32.mxu1 %v5993_v3 }
 0x1b9   :  { %5715 = vmatmul.mubr.msk.f32.vlgmr.msra.gmra.mrb[0].mxu0 %vm421_vm2, %v6359_v60  ;;  %5718 = vmatmul.mubr.msk.f32.gmra.mrb[20].mxu1 %vm421_vm2, %v6413_v43  ;;  %v6475_v52 = vpop.permute.xlu1 %1957 }
 0x1ba   :  { %1594 = vmatprep.subr.mxu0 %v6162_v4  ;;  %1413 = vmatprep.mubr.f32.mxu0 %v5993_v3  ;;  %v1969_v62 = vsel %vm1965_vm7, %v6432_v27, %v6475_v52 }
 0x1bb   :  { %1595 = vmatpush1.msra.mxu0 %v6159_v0  ;;  %1581 = vmatprep.mubr.f32.mxu1 %v5993_v3  ;;  %v1697_v0 = vsel %vm1695_vm6, %v1690_v39, %v6425_v5 }
 0x1bc   :  { %v6481_v49 = vpop.permute.xlu0 %2225  ;;  %2840 = vrot.lane.b32.xlu1 %v6646_v45, %s5996_s28 }
 0x1bd   :  { %5716 = vmatmul.mubr.msk.f32.gmra.mrb[2].mxu0 %vm421_vm2, %v6389_v16  ;;  %5719 = vmatmul.mubr.msk.f32.vlgmr.msra.gmra.mrb[22].mxu1 %vm421_vm2, %v6374_v10  ;;  %v6490_v55 = vpop.permute.xlu1 %1972 }
 0x1be   :  { %1711 = vmatpush1.msra.mxu1 %v1700_v54  ;;  %1587 = vmatprep.mubr.f32.mxu1 %v5993_v3 }
 0x1bf   :  { %1787 = vmatprep.subr.mxu1 %v1697_v0  ;;  %1658 = vmatprep.mubr.f32.mxu0 %v5993_v3 }
 0x1c0   :  { %v6497_v4 = vpop.permute.xlu0 %2223 }
 0x1c1   :  { %5720 = vmatmul.mubr.msk.f32.gmra.mrb[24].mxu1 %vm421_vm2, %v6413_v43  ;;  %5721 = vmatmul.mubr.msk.f32.vlgmr.msra.gmra.mrb[0].mxu0 %vm421_vm2, %v6374_v10  ;;  %v1960_v56 = vpop.permute.xlu1 %1959  ;;  %v2240_v24 = vsel %vm2235_vm8, %v6497_v4, %v6481_v49 }
 0x1c2   :  { %1664 = vmatprep.mubr.f32.mxu0 %v5993_v3  ;;  %1774 = vmatprep.mubr.f32.mxu1 %v5993_v3  ;;  %v1967_v15 = vsel %vm1965_vm7, %v1960_v56, %v1962_v31  ;;  %v1968_v19 = vsel %vm1965_vm7, %v6475_v52, %v1960_v56 }
 0x1c4   :  { %v6505_v57 = vpop.permute.xlu0 %2229 }
 0x1c5   :  { %5722 = vmatmul.mubr.msk.f32.gmra.mrb[2].mxu0 %vm421_vm2, %v6413_v43  ;;  %5723 = vmatmul.mubr.msk.f32.vlgmr.msra.gmra.mrb[18].mxu1 %vm421_vm2, %v6407_v22  ;;  %v6515_v60 = vpop.permute.xlu1 %2227 }
 0x1c6   :  { %1788 = vmatpush1.msra.mxu1 %v1698_v59  ;;  %1780 = vmatprep.mubr.f32.mxu1 %v5993_v3  ;;  %v2238_v30 = vsel %vm2235_vm8, %v6515_v60, %v6505_v57 }
 0x1c7   :  { %1980 = vmatprep.subr.mxu1 %v1969_v62  ;;  %1928 = vmatprep.mubr.f32.mxu0 %v5993_v3 }
 0x1c8   :  { %v1964_v63 = vpop.permute.xlu0 %1963 }
 0x1c9   :  { %5724 = vmatmul.mubr.msk.f32.gmra.mrb[20].mxu1 %vm421_vm2, %v6417_v23  ;;  %v1694_v1 = vpop.permute.xlu1 %1693  ;;  %v1971_v12 = vsel %vm1965_vm7, %v1964_v63, %v6445_v33  ;;  %v1966_v14 = vsel %vm1965_vm7, %v1962_v31, %v1964_v63 }
 0x1ca   :  { %v1696_v2 = vsel %vm1695_vm6, %v6425_v5, %v1694_v1  ;;  %v1701_v6 = vsel %vm1695_vm6, %v1694_v1, %v6429_v26  ;;  %1851 = vmatprep.mubr.f32.mxu1 %v5993_v3 }
 0x1cb   :  { %1864 = vmatprep.subr.mxu0 %v1701_v6 }
 0x1cc   :  { %v6532_v10 = vpop.permute.xlu0 %2497  ;;  %1865 = vmatpush1.msra.mxu0 %v1696_v2 }
 0x1cd   :  { %5725 = vmatmul.mubr.msk.f32.vlgmr.msra.gmra.mrb[22].mxu1 %vm421_vm2, %v6407_v22  ;;  %5727 = vmatmul.mubr.msk.f32.vlgmr.msra.gmra.mrb[0].mxu0 %vm421_vm2, %v6407_v22  ;;  %v6545_v13 = vpop.permute.xlu1 %2242  ;;  %v2239_v22 = vsel %vm2235_vm8, %v6481_v49, %v6515_v60 }
 0x1ce   :  { %1981 = vmatpush1.msra.mxu1 %v1970_v11  ;;  %2134 = vmatprep.subr.mxu0 %v1971_v12 }
 0x1cf   :  { %2057 = vmatprep.subr.mxu1 %v1967_v15  ;;  %2135 = vmatpush1.msra.mxu0 %v1966_v14 }
 0x1d0   :  { %v2234_v16 = vpop.permute.xlu0 %2233  ;;  %1857 = vmatprep.mubr.f32.mxu1 %v5993_v3  ;;  %1934 = vmatprep.mubr.f32.mxu0 %v5993_v3 }
 0x1d1   :  { %5726 = vmatmul.mubr.msk.f32.gmra.mrb[24].mxu1 %vm421_vm2, %v6417_v23  ;;  %5728 = vmatmul.mubr.msk.f32.gmra.mrb[2].mxu0 %vm421_vm2, %v6417_v23  ;;  %v2245_v17 = vpop.permute.xlu1 %2244  ;;  %v2241_v18 = vsel %vm2235_vm8, %v2234_v16, %v6497_v4 }
 0x1d2   :  { %2404 = vmatprep.subr.mxu0 %v2241_v18  ;;  %2044 = vmatprep.mubr.f32.mxu1 %v5993_v3 }
 0x1d3   :  { %2198 = vmatprep.mubr.f32.mxu0 %v5993_v3 }
 0x1d4   :  { %v2513_v23 = vpop.permute.xlu0 %2512 }
 0x1d5   :  { %5729 = vmatmul.mubr.msk.f32.vlgmr.msra.gmra.mrb[18].mxu1 %vm421_vm2, %v6490_v55  ;;  %5733 = vmatmul.mubr.msk.f32.vlgmr.msra.gmra.mrb[0].mxu0 %vm421_vm2, %v6490_v55  ;;  %v2232_v20 = vpop.permute.xlu1 %2231 }
 0x1d6   :  { %2058 = vmatpush1.msra.mxu1 %v1968_v19  ;;  %v2236_v21 = vsel %vm2235_vm8, %v2232_v20, %v2234_v16  ;;  %2050 = vmatprep.mubr.f32.mxu1 %v5993_v3  ;;  %v2237_v5 = vsel %vm2235_vm8, %v6505_v57, %v2232_v20 }
 0x1d7   :  { %2250 = vmatprep.subr.mxu1 %v2239_v22  ;;  %2405 = vmatpush1.msra.mxu0 %v2236_v21 }
 0x1d8   :  { %2204 = vmatprep.mubr.f32.mxu0 %v5993_v3  ;;  %v2502_v26 = vpop.permute.xlu0 %2501 }
 0x1d9   :  { %5730 = vmatmul.mubr.msk.f32.gmra.mrb[20].mxu1 %vm421_vm2, %v6454_v29  ;;  %5734 = vmatmul.mubr.msk.f32.gmra.mrb[2].mxu0 %vm421_vm2, %v6454_v29  ;;  %v2496_v43 = vpop.permute.xlu1 %2495 }
 0x1da   :  { %2121 = vmatprep.mubr.f32.mxu1 %v5993_v3  ;;  %2468 = vmatprep.mubr.f32.mxu0 %v5993_v3  ;;  %v2509_v33 = vsel %vm2505_vm9, %v2496_v43, %v6532_v10 }
 0x1dd   :  { %5731 = vmatmul.mubr.msk.f32.vlgmr.msra.gmra.mrb[22].mxu1 %vm421_vm2, %v6490_v55  ;;  %5739 = vmatmul.mubr.msk.f32.vlgmr.msra.gmra.mrb[0].mxu0 %vm421_vm2, %v6545_v13  ;;  %v2494_v25 = vpop.permute.xlu1 %2493 }
 0x1de   :  { %2251 = vmatpush1.msra.mxu1 %v2240_v24  ;;  %2127 = vmatprep.mubr.f32.mxu1 %v5993_v3  ;;  %v2510_v8 = vsel %vm2505_vm9, %v2494_v25, %v2496_v43 }
 0x1df   :  { %2327 = vmatprep.subr.mxu1 %v2237_v5  ;;  %2474 = vmatprep.mubr.f32.mxu0 %v5993_v3  ;;  %v43_v5 = vld [vmem:[%s7036_s4 + $0x20] sm:$0xff] }
 0x1e1   :  { %5732 = vmatmul.mubr.msk.f32.gmra.mrb[24].mxu1 %vm421_vm2, %v6454_v29  ;;  %5740 = vmatmul.mubr.msk.f32.gmra.mrb[2].mxu0 %vm421_vm2, %v2245_v17  ;;  %v2504_v27 = vpop.permute.xlu1 %2503  ;;  %v2500_v29 = vpop.permute.xlu0 %2499 }
 0x1e2   :  { %v2506_v28 = vsel %vm2505_vm9, %v2502_v26, %v2504_v27  ;;  %v2511_v41 = vsel %vm2505_vm9, %v2504_v27, %v2494_v25  ;;  %2314 = vmatprep.mubr.f32.mxu1 %v5993_v3  ;;  %2738 = vmatprep.mubr.f32.mxu0 %v5993_v3  ;;  %v2507_v34 = vsel %vm2505_vm9, %v2500_v29, %v2502_v26  ;;  %v6802_v26 = vld [vmem:[%s7035_s2 + $0x10] sm:$0xff] }
 0x1e3   :  { %2674 = vmatprep.subr.mxu0 %v2511_v41  ;;  %v2508_v36 = vsel %vm2505_vm9, %v6532_v10, %v2500_v29  ;;  %v44_v41 = vld [vmem:[%s7036_s4 + $0x28] sm:$0xff] }
 0x1e4   :  { %2675 = vmatpush1.msra.mxu0 %v2506_v28 }
 0x1e5   :  { %5735 = vmatmul.mubr.msk.f32.vlgmr.msra.gmra.mrb[18].mxu1 %vm421_vm2, %v6545_v13  ;;  %5745 = vmatmul.mubr.msk.f32.vlgmr.msra.gmra.mrb[0].mxu0 %vm421_vm2, %v2513_v23  ;;  %v2515_v39 = vpop.permute.xlu1 %2514 }
 0x1e6   :  { %2328 = vmatpush1.msra.mxu1 %v2238_v30  ;;  %2320 = vmatprep.mubr.f32.mxu1 %v5993_v3 }
 0x1e7   :  { %2520 = vmatprep.subr.mxu1 %v2509_v33  ;;  %2744 = vmatprep.mubr.f32.mxu0 %v5993_v3 }
 0x1e9   :  { %5736 = vmatmul.mubr.msk.f32.gmra.mrb[20].mxu1 %vm421_vm2, %v2245_v17  ;;  %5746 = vmatmul.mubr.msk.f32.gmra.mrb[2].mxu0 %vm421_vm2, %v2515_v39 }
 0x1ea   :  { %2391 = vmatprep.mubr.f32.mxu1 %v5993_v3  ;;  %2908 = vmatprep.mubr.f32.mxu0 %v5993_v3 }
 0x1ed   :  { %5737 = vmatmul.mubr.msk.f32.vlgmr.msra.gmra.mrb[22].mxu1 %vm421_vm2, %v6545_v13 }
 0x1ee   :  { %2521 = vmatpush1.msra.mxu1 %v2510_v8  ;;  %2397 = vmatprep.mubr.f32.mxu1 %v5993_v3 }
 0x1ef   :  { %2597 = vmatprep.subr.mxu1 %v2507_v34 }
 0x1f1   :  { %5738 = vmatmul.mubr.msk.f32.gmra.mrb[24].mxu1 %vm421_vm2, %v2245_v17 }
 0x1f2   :  { %2584 = vmatprep.mubr.f32.mxu1 %v5993_v3 }
 0x1f5   :  { %5741 = vmatmul.mubr.msk.f32.vlgmr.msra.gmra.mrb[18].mxu1 %vm421_vm2, %v2513_v23 }
 0x1f6   :  { %2598 = vmatpush1.msra.mxu1 %v2508_v36  ;;  %2590 = vmatprep.mubr.f32.mxu1 %v5993_v3 }
 0x1f9   :  { %5742 = vmatmul.mubr.msk.f32.gmra.mrb[20].mxu1 %vm421_vm2, %v2515_v39 }
 0x1fa   :  { %2661 = vmatprep.mubr.f32.mxu1 %v5993_v3 }
 0x1fb   :  { %v2766_v49 = vpop.permute.xlu1 %2765 }
 0x1fd   :  { %5743 = vmatmul.mubr.msk.f32.vlgmr.msra.gmra.mrb[22].mxu1 %vm421_vm2, %v2513_v23 }
 0x1fe   :  { %2667 = vmatprep.mubr.f32.mxu1 %v5993_v3 }
 0x201   :  { %5744 = vmatmul.mubr.msk.f32.gmra.mrb[24].mxu1 %vm421_vm2, %v2515_v39 }
 0x202   :  { %5117 = vmatprep.mubr.f32.mxu1 %v5993_v3 }
 0x22e   :  { %v2841_v25 = vpop.permute.xlu1 %2840 }
 0x254   :  { %v652_v31 = vpop.f32.mrb[26].mxu1 }
 0x255   :  { %v654_v52 = vpop.f32.mrb[27].mxu1 }
 0x2b8   :  { %v2740_v54 = vpop.f32.mrb[0].mxu0 }
 0x2b9   :  { %v2777_v55 = vadd.f32 %v2766_v49, %v2740_v54  ;;  %v2742_v0 = vpop.f32.mrb[1].mxu0 }
 0x2ba   :  { %v2778_v4 = vadd.f32 %v2766_v49, %v2742_v0 }
 0x2bb   :  { %v2789_v56 = vmax.f32 %v2777_v55, 0.0 }
 0x2bc   :  { %v2746_v57 = vpop.f32.mrb[2].mxu0  ;;  %v2790_v60 = vmax.f32 %v2778_v4, 0.0 }
 0x2bd   :  { %v6651_v59 = vmul.f32 %v2789_v56, %v6154_v58  ;;  %v6653_v62 = vadd.f32 %v2746_v57, %v652_v31  ;;  %v2748_v63 = vpop.f32.mrb[3].mxu0 }
 0x2be   :  { %v6655_v1 = vadd.f32 %v2748_v63, %v654_v52  ;;  %v6660_v2 = vmul.f32 %v2790_v60, %v6156_v61 }
 0x2bf   :  { %2829 = vrot.lane.b32.xlu0 %v6651_v59, %s5995_s1 }
 0x2c3   :  { %2831 = vrot.lane.b32.xlu0 %v6660_v2, %s5995_s1 }
 0x2c8   :  { %v2586_v6 = vpop.f32.mrb[18].mxu1 }
 0x2c9   :  { %v2773_v10 = vadd.f32 %v2766_v49, %v2586_v6  ;;  %v2588_v11 = vpop.f32.mrb[19].mxu1 }
 0x2ca   :  { %v2774_v58 = vadd.f32 %v2766_v49, %v2588_v11 }
 0x2cb   :  { %v2785_v12 = vmax.f32 %v2773_v10, 0.0 }
 0x2cc   :  { %v6664_v13 = vpop.f32.mrb[20].mxu1  ;;  %v2786_v15 = vmax.f32 %v2774_v58, 0.0 }
 0x2cd   :  { %v6667_v14 = vmul.f32 %v2785_v12, %v6114_v32  ;;  %v6669_v16 = vpop.f32.mrb[21].mxu1 }
 0x2ce   :  { %v6676_v17 = vmul.f32 %v2786_v15, %v6116_v35  ;;  %v42_v35 = vld [vmem:[%s7036_s4 + $0x18] sm:$0xff] }
 0x2cf   :  { %2803 = vrot.lane.b32.xlu1 %v6667_v14, %s5997_s6  ;;  %2821 = vrot.lane.b32.xlu0 %v6667_v14, %s5995_s1 }
 0x2d0   :  { %v2663_v61 = vpop.f32.mrb[22].mxu1 }
 0x2d1   :  { %v2775_v18 = vadd.f32 %v2766_v49, %v2663_v61  ;;  %v2665_v19 = vpop.f32.mrb[23].mxu1 }
 0x2d2   :  { %v2776_v20 = vadd.f32 %v2766_v49, %v2665_v19 }
 0x2d3   :  { %v2787_v21 = vmax.f32 %v2775_v18, 0.0  ;;  %2823 = vrot.lane.b32.xlu1 %v6676_v17, %s5995_s1 }
 0x2d4   :  { %v2788_v32 = vmax.f32 %v2776_v20, 0.0  ;;  %v6680_v22 = vpop.f32.mrb[24].mxu1 }
 0x2d5   :  { %v6683_v43 = vmul.f32 %v2787_v21, %v6143_v48  ;;  %v6685_v23 = vpop.f32.mrb[25].mxu1  ;;  %v40_v48 = vld [vmem:[%s7036_s4 + $0x8] sm:$0xff] }
 0x2d6   :  { %v6688_v24 = vmul.f32 %v2788_v32, %v6173_v7 }
 0x2d7   :  { %2825 = vrot.lane.b32.xlu0 %v6683_v43, %s5995_s1 }
 0x2d8   :  { %2827 = vrot.lane.b32.xlu1 %v6688_v24, %s5995_s1 }
 0x2db   :  { %2805 = vrot.lane.b32.xlu0 %v6676_v17, %s5997_s6 }
 0x2dc   :  { %2813 = vrot.lane.b32.xlu1 %v6660_v2, %s5997_s6 }
 0x2df   :  { %2807 = vrot.lane.b32.xlu0 %v6683_v43, %s5997_s6 }
 0x2e0   :  { %3272 = vrot.lane.b32.xlu1 %v6667_v14, %s5998_s7 }
 0x2e3   :  { %2811 = vrot.lane.b32.xlu0 %v6651_v59, %s5997_s6 }
 0x2e4   :  { %2809 = vrot.lane.b32.xlu1 %v6688_v24, %s5997_s6 }
 0x2e7   :  { %3274 = vrot.lane.b32.xlu0 %v6676_v17, %s5998_s7 }
 0x2e8   :  { %3282 = vrot.lane.b32.xlu1 %v6660_v2, %s5998_s7 }
 0x2eb   :  { %3290 = vrot.lane.b32.xlu0 %v6646_v45, %s5999_s8 }
 0x2ec   :  { %3276 = vrot.lane.b32.xlu1 %v6683_v43, %s5998_s7 }
 0x2ef   :  { %3278 = vrot.lane.b32.xlu0 %v6688_v24, %s5998_s7 }
 0x2f0   :  { %3280 = vrot.lane.b32.xlu1 %v6651_v59, %s5998_s7 }
 0x2f3   :  { %3513 = vrot.lane.b32.xlu0 %v6667_v14, %s6000_s9 }
 0x2f4   :  { %3515 = vrot.lane.b32.xlu1 %v6676_v17, %s6000_s9 }
 0x2f7   :  { %3523 = vrot.lane.b32.xlu0 %v6660_v2, %s6000_s9 }
 0x2f8   :  { %3531 = vrot.lane.b32.xlu1 %v6646_v45, %s6001_s10 }
 0x2fb   :  { %3517 = vrot.lane.b32.xlu0 %v6683_v43, %s6000_s9 }
 0x2fc   :  { %3519 = vrot.lane.b32.xlu1 %v6688_v24, %s6000_s9 }
 0x2ff   :  { %3521 = vrot.lane.b32.xlu0 %v6651_v59, %s6000_s9 }
 0x300   :  { %3754 = vrot.lane.b32.xlu1 %v6646_v45, %s6002_s11 }
 0x303   :  { %3979 = vrot.lane.b32.xlu0 %v6676_v17, %s6003_s12 }
 0x304   :  { %3981 = vrot.lane.b32.xlu1 %v6683_v43, %s6003_s12 }
 0x307   :  { %3977 = vrot.lane.b32.xlu0 %v6667_v14, %s6003_s12 }
 0x308   :  { %3995 = vrot.lane.b32.xlu1 %v6646_v45, %s6004_s13 }
 0x30b   :  { %3987 = vrot.lane.b32.xlu0 %v6660_v2, %s6003_s12 }
 0x30c   :  { %3985 = vrot.lane.b32.xlu1 %v6651_v59, %s6003_s12 }
 0x30f   :  { %4222 = vrot.lane.b32.xlu0 %v6683_v43, %s6005_s14 }
 0x310   :  { %4220 = vrot.lane.b32.xlu1 %v6676_v17, %s6005_s14 }
 0x313   :  { %3983 = vrot.lane.b32.xlu0 %v6688_v24, %s6003_s12 }
 0x314   :  { %4218 = vrot.lane.b32.xlu1 %v6667_v14, %s6005_s14 }
 0x317   :  { %4236 = vrot.lane.b32.xlu0 %v6646_v45, %s6006_s15 }
 0x318   :  { %4228 = vrot.lane.b32.xlu1 %v6660_v2, %s6005_s14 }
 0x31b   :  { %4226 = vrot.lane.b32.xlu0 %v6651_v59, %s6005_s14 }
 0x31c   :  { %4224 = vrot.lane.b32.xlu1 %v6688_v24, %s6005_s14 }
 0x31f   :  { %4461 = vrot.lane.b32.xlu0 %v6676_v17, %s6007_s16 }
 0x320   :  { %4463 = vrot.lane.b32.xlu1 %v6683_v43, %s6007_s16 }
 0x323   :  { %4459 = vrot.lane.b32.xlu0 %v6667_v14, %s6007_s16 }
 0x324   :  { %4477 = vrot.lane.b32.xlu1 %v6646_v45, %s6009_s18 }
 0x327   :  { %4469 = vrot.lane.b32.xlu0 %v6660_v2, %s6007_s16 }
 0x328   :  { %4467 = vrot.lane.b32.xlu1 %v6651_v59, %s6007_s16 }
 0x32b   :  { %4465 = vrot.lane.b32.xlu0 %v6688_v24, %s6007_s16 }
 0x32c   :  { %4702 = vrot.lane.b32.xlu1 %v6676_v17, %s6008_s17 }
 0x32f   :  { %4704 = vrot.lane.b32.xlu0 %v6683_v43, %s6008_s17 }
 0x330   :  { %4700 = vrot.lane.b32.xlu1 %v6667_v14, %s6008_s17 }
 0x331   :  { %v2830_v7 = vpop.permute.xlu0 %2829 }
 0x333   :  { %4718 = vrot.lane.b32.xlu0 %v6646_v45, %s6010_s19 }
 0x334   :  { %4706 = vrot.lane.b32.xlu1 %v6688_v24, %s6008_s17 }
 0x335   :  { %v2832_v27 = vpop.permute.xlu0 %2831 }
 0x336   :  { %v2833_v49 = vsel %vm408_vm1, %v2830_v7, %v2832_v27 }
 0x337   :  { %4708 = vrot.lane.b32.xlu0 %v6651_v59, %s6008_s17 }
 0x338   :  { %4710 = vrot.lane.b32.xlu1 %v6660_v2, %s6008_s17 }
 0x33b   :  { %2770 = vperm.xlu0 %5990, %v42_v35  }
 0x33c   :  { %311 = vperm.xlu1 %5991, %v40_v48  }
 0x33f   :  { %4958 = vrot.lane.b32.xlu0 %v6802_v26, %s6011_s30 }
 0x340   :  { %4943 = vperm.xlu1 %5991, %v43_v5  }
 0x341   :  { %v2804_v28 = vpop.permute.xlu1 %2803  ;;  %v2822_v30 = vpop.permute.xlu0 %2821 }
 0x342   :  { %v2838_v29 = vsel %vm408_vm1, %v2832_v27, %v2822_v30 }
 0x343   :  { %5428 = vrot.lane.b32.xlu0 %v6802_v26, %s5996_s28 }
 0x344   :  { %5659 = vperm.xlu1 %5991, %v44_v41  }
 0x345   :  { %v2824_v33 = vpop.permute.xlu1 %2823 }
 0x346   :  { %v2837_v39 = vsel %vm408_vm1, %v2822_v30, %v2824_v33 }
 0x347   :  { %2844 = vmatprep.subr.mxu0 %v2837_v39 }
 0x348   :  { %2845 = vmatpush1.msra.mxu0 %v2838_v29 }
 0x349   :  { %5747 = vmatmul.mubr.msk.f32.vlgmr.msra.gmra.mrb[4].mxu0 %vm421_vm2, %v2841_v25  ;;  %v2826_v8 = vpop.permute.xlu0 %2825 }
 0x34a   :  { %v2828_v34 = vpop.permute.xlu1 %2827  ;;  %2979 = vmatprep.mubr.f32.mxu0 %v5993_v3  ;;  %v2836_v31 = vsel %vm408_vm1, %v2824_v33, %v2826_v8 }
 0x34b   :  { %v2835_v36 = vsel %vm408_vm1, %v2826_v8, %v2828_v34  ;;  %v2834_v54 = vsel %vm408_vm1, %v2828_v34, %v2830_v7 }
 0x34c   :  { %2915 = vmatprep.subr.mxu0 %v2835_v36 }
 0x34d   :  { %v2806_v52 = vpop.permute.xlu0 %2805  ;;  %2916 = vmatpush1.msra.mxu0 %v2836_v31 }
 0x34e   :  { %5748 = vmatmul.mubr.msk.f32.vlgmr.msra.gmra.mrb[6].mxu0 %vm421_vm2, %v2841_v25  ;;  %2986 = vmatprep.subr.mxu0 %v2833_v49  ;;  %v2814_v55 = vpop.permute.xlu1 %2813  ;;  %v2819_v0 = vsel %vm389_vm3, %v2804_v28, %v2806_v52 }
 0x34f   :  { %2987 = vmatpush1.msra.mxu0 %v2834_v54  ;;  %3050 = vmatprep.mubr.f32.mxu0 %v5993_v3  ;;  %v2820_v56 = vsel %vm389_vm3, %v2814_v55, %v2804_v28 }
 0x350   :  { %3059 = vmatprep.subr.mxu0 %v2819_v0 }
 0x351   :  { %v2808_v4 = vpop.permute.xlu0 %2807 }
 0x352   :  { %5749 = vmatmul.mubr.msk.f32.vlgmr.msra.gmra.mrb[8].mxu0 %vm421_vm2, %v2841_v25  ;;  %v3273_v57 = vpop.permute.xlu1 %3272  ;;  %v2818_v10 = vsel %vm389_vm3, %v2806_v52, %v2808_v4 }
 0x353   :  { %3060 = vmatpush1.msra.mxu0 %v2820_v56  ;;  %3123 = vmatprep.mubr.f32.mxu0 %v5993_v3 }
 0x355   :  { %v2812_v60 = vpop.permute.xlu0 %2811 }
 0x356   :  { %5750 = vmatmul.mubr.msk.f32.vlgmr.msra.gmra.mrb[4].mxu0 %vm421_vm2, %v6646_v45  ;;  %v2810_v63 = vpop.permute.xlu1 %2809  ;;  %v2815_v58 = vsel %vm389_vm3, %v2812_v60, %v2814_v55 }
 0x357   :  { %v2817_v6 = vsel %vm389_vm3, %v2808_v4, %v2810_v63  ;;  %3194 = vmatprep.mubr.f32.mxu0 %v5993_v3  ;;  %v2816_v12 = vsel %vm389_vm3, %v2810_v63, %v2812_v60 }
 0x358   :  { %3130 = vmatprep.subr.mxu0 %v2817_v6 }
 0x359   :  { %v3275_v11 = vpop.permute.xlu0 %3274  ;;  %3131 = vmatpush1.msra.mxu0 %v2818_v10 }
 0x35a   :  { %5751 = vmatmul.mubr.msk.f32.vlgmr.msra.gmra.mrb[6].mxu0 %vm421_vm2, %v6646_v45  ;;  %3201 = vmatprep.subr.mxu0 %v2815_v58  ;;  %v3283_v15 = vpop.permute.xlu1 %3282  ;;  %v3288_v61 = vsel %vm904_vm4, %v3273_v57, %v3275_v11 }
 0x35b   :  { %3202 = vmatpush1.msra.mxu0 %v2816_v12  ;;  %3265 = vmatprep.mubr.f32.mxu0 %v5993_v3  ;;  %v3289_v19 = vsel %vm904_vm4, %v3283_v15, %v3273_v57 }
 0x35c   :  { %3294 = vmatprep.subr.mxu0 %v3288_v61 }
 0x35d   :  { %v3291_v18 = vpop.permute.xlu0 %3290 }
 0x35e   :  { %5752 = vmatmul.mubr.msk.f32.vlgmr.msra.gmra.mrb[8].mxu0 %vm421_vm2, %v6646_v45  ;;  %v3277_v20 = vpop.permute.xlu1 %3276 }
 0x35f   :  { %3295 = vmatpush1.msra.mxu0 %v3289_v19  ;;  %3358 = vmatprep.mubr.f32.mxu0 %v5993_v3  ;;  %v3287_v48 = vsel %vm904_vm4, %v3275_v11, %v3277_v20 }
 0x361   :  { %v3279_v21 = vpop.permute.xlu0 %3278 }
 0x362   :  { %5753 = vmatmul.mubr.msk.f32.vlgmr.msra.gmra.mrb[4].mxu0 %vm421_vm2, %v3291_v18  ;;  %v3281_v32 = vpop.permute.xlu1 %3280  ;;  %v3286_v35 = vsel %vm904_vm4, %v3277_v20, %v3279_v21 }
 0x363   :  { %3365 = vmatprep.subr.mxu0 %v3286_v35  ;;  %3429 = vmatprep.mubr.f32.mxu0 %v5993_v3  ;;  %v3284_v45 = vsel %vm904_vm4, %v3281_v32, %v3283_v15  ;;  %v3285_v25 = vsel %vm904_vm4, %v3279_v21, %v3281_v32 }
 0x364   :  { %3366 = vmatpush1.msra.mxu0 %v3287_v48 }
 0x365   :  { %v3514_v7 = vpop.permute.xlu0 %3513  ;;  %3436 = vmatprep.subr.mxu0 %v3284_v45 }
 0x366   :  { %5754 = vmatmul.mubr.msk.f32.vlgmr.msra.gmra.mrb[6].mxu0 %vm421_vm2, %v3291_v18  ;;  %v3516_v5 = vpop.permute.xlu1 %3515 }
 0x367   :  { %3437 = vmatpush1.msra.mxu0 %v3285_v25  ;;  %v3529_v27 = vsel %vm1174_vm5, %v3514_v7, %v3516_v5  ;;  %3500 = vmatprep.mubr.f32.mxu0 %v5993_v3 }
 0x368   :  { %3535 = vmatprep.subr.mxu0 %v3529_v27 }
 0x369   :  { %v3524_v28 = vpop.permute.xlu0 %3523 }
 0x36a   :  { %v3530_v41 = vsel %vm1174_vm5, %v3524_v28, %v3514_v7  ;;  %5755 = vmatmul.mubr.msk.f32.vlgmr.msra.gmra.mrb[8].mxu0 %vm421_vm2, %v3291_v18  ;;  %v3532_v30 = vpop.permute.xlu1 %3531 }
 0x36b   :  { %3536 = vmatpush1.msra.mxu0 %v3530_v41  ;;  %3599 = vmatprep.mubr.f32.mxu0 %v5993_v3 }
 0x36d   :  { %v3518_v33 = vpop.permute.xlu0 %3517 }
 0x36e   :  { %5756 = vmatmul.mubr.msk.f32.vlgmr.msra.gmra.mrb[4].mxu0 %vm421_vm2, %v3532_v30  ;;  %v3520_v39 = vpop.permute.xlu1 %3519  ;;  %v3528_v8 = vsel %vm1174_vm5, %v3516_v5, %v3518_v33 }
 0x36f   :  { %v3527_v29 = vsel %vm1174_vm5, %v3518_v33, %v3520_v39  ;;  %3670 = vmatprep.mubr.f32.mxu0 %v5993_v3 }
 0x370   :  { %3606 = vmatprep.subr.mxu0 %v3527_v29 }
 0x371   :  { %v3522_v34 = vpop.permute.xlu0 %3521  ;;  %3607 = vmatpush1.msra.mxu0 %v3528_v8 }
 0x372   :  { %v3526_v36 = vsel %vm1174_vm5, %v3520_v39, %v3522_v34  ;;  %5757 = vmatmul.mubr.msk.f32.vlgmr.msra.gmra.mrb[6].mxu0 %vm421_vm2, %v3532_v30  ;;  %v3755_v31 = vpop.permute.xlu1 %3754  ;;  %v3525_v52 = vsel %vm1174_vm5, %v3522_v34, %v3524_v28 }
 0x373   :  { %3677 = vmatprep.subr.mxu0 %v3525_v52  ;;  %3741 = vmatprep.mubr.f32.mxu0 %v5993_v3 }
 0x374   :  { %3678 = vmatpush1.msra.mxu0 %v3526_v36 }
 0x375   :  { %v3980_v49 = vpop.permute.xlu0 %3979  ;;  %3758 = vmatprep.subr.mxu0 %v6676_v17 }
 0x376   :  { %5758 = vmatmul.mubr.msk.f32.vlgmr.msra.gmra.mrb[8].mxu0 %vm421_vm2, %v3532_v30  ;;  %v3982_v54 = vpop.permute.xlu1 %3981 }
 0x377   :  { %3759 = vmatpush1.msra.mxu0 %v6667_v14  ;;  %3822 = vmatprep.mubr.f32.mxu0 %v5993_v3  ;;  %v3992_v14 = vsel %vm1695_vm6, %v3980_v49, %v3982_v54 }
 0x378   :  { %3829 = vmatprep.subr.mxu0 %v6688_v24 }
 0x379   :  { %v3978_v55 = vpop.permute.xlu0 %3977 }
 0x37a   :  { %5759 = vmatmul.mubr.msk.f32.vlgmr.msra.gmra.mrb[4].mxu0 %vm421_vm2, %v3755_v31  ;;  %v3996_v0 = vpop.permute.xlu1 %3995 }
 0x37b   :  { %3830 = vmatpush1.msra.mxu0 %v6683_v43  ;;  %3893 = vmatprep.mubr.f32.mxu0 %v5993_v3  ;;  %v3993_v43 = vsel %vm1695_vm6, %v3978_v55, %v3980_v49 }
 0x37c   :  { %3900 = vmatprep.subr.mxu0 %v6660_v2 }
 0x37d   :  { %v3988_v17 = vpop.permute.xlu0 %3987 }
 0x37e   :  { %5760 = vmatmul.mubr.msk.f32.vlgmr.msra.gmra.mrb[6].mxu0 %vm421_vm2, %v3755_v31  ;;  %v3986_v4 = vpop.permute.xlu1 %3985  ;;  %v3994_v63 = vsel %vm1695_vm6, %v3988_v17, %v3978_v55 }
 0x37f   :  { %3901 = vmatpush1.msra.mxu0 %v6651_v59  ;;  %3964 = vmatprep.mubr.f32.mxu0 %v5993_v3  ;;  %v3989_v10 = vsel %vm1695_vm6, %v3986_v4, %v3988_v17 }
 0x380   :  { %3999 = vmatprep.subr.mxu0 %v3992_v14 }
 0x381   :  { %v4223_v24 = vpop.permute.xlu0 %4222 }
 0x382   :  { %5761 = vmatmul.mubr.msk.f32.vlgmr.msra.gmra.mrb[8].mxu0 %vm421_vm2, %v3755_v31  ;;  %v4221_v56 = vpop.permute.xlu1 %4220 }
 0x383   :  { %4000 = vmatpush1.msra.mxu0 %v3993_v43  ;;  %4063 = vmatprep.mubr.f32.mxu0 %v5993_v3  ;;  %v4233_v58 = vsel %vm1965_vm7, %v4221_v56, %v4223_v24 }
 0x385   :  { %v3984_v2 = vpop.permute.xlu0 %3983 }
 0x386   :  { %v3991_v59 = vsel %vm1695_vm6, %v3982_v54, %v3984_v2  ;;  %5762 = vmatmul.mubr.msk.f32.vlgmr.msra.gmra.mrb[4].mxu0 %vm421_vm2, %v3996_v0  ;;  %v4219_v57 = vpop.permute.xlu1 %4218  ;;  %v3990_v60 = vsel %vm1695_vm6, %v3984_v2, %v3986_v4 }
 0x387   :  { %4070 = vmatprep.subr.mxu0 %v3990_v60  ;;  %4134 = vmatprep.mubr.f32.mxu0 %v5993_v3  ;;  %v4234_v15 = vsel %vm1965_vm7, %v4219_v57, %v4221_v56 }
 0x388   :  { %4071 = vmatpush1.msra.mxu0 %v3991_v59 }
 0x389   :  { %v4237_v6 = vpop.permute.xlu0 %4236  ;;  %4141 = vmatprep.subr.mxu0 %v3994_v63 }
 0x38a   :  { %5763 = vmatmul.mubr.msk.f32.vlgmr.msra.gmra.mrb[6].mxu0 %vm421_vm2, %v3996_v0  ;;  %v4229_v11 = vpop.permute.xlu1 %4228 }
 0x38b   :  { %4142 = vmatpush1.msra.mxu0 %v3989_v10  ;;  %4205 = vmatprep.mubr.f32.mxu0 %v5993_v3  ;;  %v4235_v32 = vsel %vm1965_vm7, %v4229_v11, %v4219_v57 }
 0x38c   :  { %4240 = vmatprep.subr.mxu0 %v4233_v58 }
 0x38d   :  { %v4227_v12 = vpop.permute.xlu0 %4226 }
 0x38e   :  { %5764 = vmatmul.mubr.msk.f32.vlgmr.msra.gmra.mrb[8].mxu0 %vm421_vm2, %v3996_v0  ;;  %v4225_v61 = vpop.permute.xlu1 %4224  ;;  %v4230_v48 = vsel %vm1965_vm7, %v4227_v12, %v4229_v11 }
 0x38f   :  { %4241 = vmatpush1.msra.mxu0 %v4234_v15  ;;  %v4231_v18 = vsel %vm1965_vm7, %v4225_v61, %v4227_v12  ;;  %4304 = vmatprep.mubr.f32.mxu0 %v5993_v3  ;;  %v4232_v20 = vsel %vm1965_vm7, %v4223_v24, %v4225_v61 }
 0x390   :  { %4311 = vmatprep.subr.mxu0 %v4231_v18 }
 0x391   :  { %v4462_v19 = vpop.permute.xlu0 %4461 }
 0x392   :  { %5765 = vmatmul.mubr.msk.f32.vlgmr.msra.gmra.mrb[4].mxu0 %vm421_vm2, %v4237_v6  ;;  %v4464_v21 = vpop.permute.xlu1 %4463 }
 0x393   :  { %4312 = vmatpush1.msra.mxu0 %v4232_v20  ;;  %4375 = vmatprep.mubr.f32.mxu0 %v5993_v3  ;;  %v4474_v7 = vsel %vm2235_vm8, %v4462_v19, %v4464_v21 }
 0x394   :  { %4382 = vmatprep.subr.mxu0 %v4235_v32 }
 0x395   :  { %v4460_v35 = vpop.permute.xlu0 %4459 }
 0x396   :  { %5766 = vmatmul.mubr.msk.f32.vlgmr.msra.gmra.mrb[6].mxu0 %vm421_vm2, %v4237_v6  ;;  %v4478_v45 = vpop.permute.xlu1 %4477  ;;  %v4475_v5 = vsel %vm2235_vm8, %v4460_v35, %v4462_v19 }
 0x397   :  { %4383 = vmatpush1.msra.mxu0 %v4230_v48  ;;  %4446 = vmatprep.mubr.f32.mxu0 %v5993_v3 }
 0x398   :  { %4481 = vmatprep.subr.mxu0 %v4474_v7 }
 0x399   :  { %v4470_v25 = vpop.permute.xlu0 %4469 }
 0x39a   :  { %5767 = vmatmul.mubr.msk.f32.vlgmr.msra.gmra.mrb[8].mxu0 %vm421_vm2, %v4237_v6  ;;  %v4468_v27 = vpop.permute.xlu1 %4467  ;;  %v4476_v39 = vsel %vm2235_vm8, %v4470_v25, %v4460_v35 }
 0x39b   :  { %4482 = vmatpush1.msra.mxu0 %v4475_v5  ;;  %4545 = vmatprep.mubr.f32.mxu0 %v5993_v3  ;;  %v4471_v8 = vsel %vm2235_vm8, %v4468_v27, %v4470_v25 }
 0x39d   :  { %v4466_v28 = vpop.permute.xlu0 %4465 }
 0x39e   :  { %v4473_v41 = vsel %vm2235_vm8, %v4464_v21, %v4466_v28  ;;  %5768 = vmatmul.mubr.msk.f32.vlgmr.msra.gmra.mrb[4].mxu0 %vm421_vm2, %v4478_v45  ;;  %v4703_v30 = vpop.permute.xlu1 %4702  ;;  %v4472_v33 = vsel %vm2235_vm8, %v4466_v28, %v4468_v27 }
 0x39f   :  { %4552 = vmatprep.subr.mxu0 %v4472_v33  ;;  %4616 = vmatprep.mubr.f32.mxu0 %v5993_v3 }
 0x3a0   :  { %4553 = vmatpush1.msra.mxu0 %v4473_v41 }
 0x3a1   :  { %v4705_v29 = vpop.permute.xlu0 %4704  ;;  %4623 = vmatprep.subr.mxu0 %v4476_v39 }
 0x3a2   :  { %5769 = vmatmul.mubr.msk.f32.vlgmr.msra.gmra.mrb[6].mxu0 %vm421_vm2, %v4478_v45  ;;  %v4701_v34 = vpop.permute.xlu1 %4700  ;;  %v4715_v36 = vsel %vm2505_vm9, %v4703_v30, %v4705_v29 }
 0x3a3   :  { %4624 = vmatpush1.msra.mxu0 %v4471_v8  ;;  %4687 = vmatprep.mubr.f32.mxu0 %v5993_v3  ;;  %v4716_v52 = vsel %vm2505_vm9, %v4701_v34, %v4703_v30 }
 0x3a4   :  { %4722 = vmatprep.subr.mxu0 %v4715_v36 }
 0x3a5   :  { %v4719_v31 = vpop.permute.xlu0 %4718 }
 0x3a6   :  { %5770 = vmatmul.mubr.msk.f32.vlgmr.msra.gmra.mrb[8].mxu0 %vm421_vm2, %v4478_v45  ;;  %v4707_v49 = vpop.permute.xlu1 %4706 }
 0x3a7   :  { %4723 = vmatpush1.msra.mxu0 %v4716_v52  ;;  %4786 = vmatprep.mubr.f32.mxu0 %v5993_v3  ;;  %v4714_v17 = vsel %vm2505_vm9, %v4705_v29, %v4707_v49 }
 0x3a9   :  { %v4709_v54 = vpop.permute.xlu0 %4708 }
 0x3aa   :  { %5771 = vmatmul.mubr.msk.f32.vlgmr.msra.gmra.mrb[4].mxu0 %vm421_vm2, %v4719_v31  ;;  %v4711_v55 = vpop.permute.xlu1 %4710  ;;  %v4713_v0 = vsel %vm2505_vm9, %v4707_v49, %v4709_v54 }
 0x3ab   :  { %4793 = vmatprep.subr.mxu0 %v4713_v0  ;;  %4857 = vmatprep.mubr.f32.mxu0 %v5993_v3  ;;  %v4717_v4 = vsel %vm2505_vm9, %v4711_v55, %v4701_v34  ;;  %v4712_v14 = vsel %vm2505_vm9, %v4709_v54, %v4711_v55 }
 0x3ac   :  { %4794 = vmatpush1.msra.mxu0 %v4714_v17 }
 0x3ad   :  { %4864 = vmatprep.subr.mxu0 %v4717_v4 }
 0x3ae   :  { %5772 = vmatmul.mubr.msk.f32.vlgmr.msra.gmra.mrb[6].mxu0 %vm421_vm2, %v4719_v31 }
 0x3af   :  { %4865 = vmatpush1.msra.mxu0 %v4712_v14  ;;  %4928 = vmatprep.mubr.f32.mxu0 %v5993_v3 }
 0x3b2   :  { %5773 = vmatmul.mubr.msk.f32.vlgmr.msra.gmra.mrb[8].mxu0 %vm421_vm2, %v4719_v31 }
 0x3b3   :  { %5046 = vmatprep.mubr.f32.mxu0 %v5993_v3 }
 0x3ba   :  { %v2771_v24 = vpop.permute.xlu0 %2770 }
 0x3bb   :  { %v2779_v43 = vadd.f32 %v2771_v24, %v6664_v13  ;;  %v2781_v56 = vadd.f32 %v2771_v24, %v6680_v22  ;;  %v312_v2 = vpop.permute.xlu1 %311  ;;  %v2780_v59 = vadd.f32 %v2771_v24, %v6669_v16  ;;  %v2783_v9 = vadd.f32 %v6653_v62, %v2771_v24 }
 0x3bc   :  { %v2782_v57 = vadd.f32 %v2771_v24, %v6685_v23  ;;  %v2784_v10 = vadd.f32 %v6655_v1, %v2771_v24  ;;  %v322_v11 = vadd.f32 %v312_v2, %v6145_v51  ;;  %v323_v13 = vadd.f32 %v312_v2, %v6150_v53 }
 0x3bd   :  { %v2798_v60 = vmax.f32 %v2780_v59, 0.0  ;;  %v2797_v63 = vmax.f32 %v2779_v43, 0.0  ;;  %v2799_v6 = vmax.f32 %v2781_v56, 0.0  ;;  %v321_v16 = vadd.f32 %v312_v2, %v6123_v40 }
 0x3be   :  { %v2800_v58 = vmax.f32 %v2782_v57, 0.0  ;;  %v4959_v12 = vpop.permute.xlu0 %4958  ;;  %v2802_v62 = vmax.f32 %v2784_v10, 0.0  ;;  %v335_v22 = vmax.f32 %v323_v13, 0.0  ;;  %v320_v23 = vadd.f32 %v312_v2, %v6118_v38 }
 0x3bf   :  { %5774 = vmatprep.subr.msk.mxu0 %vm4963_vm10, %v2798_v60  ;;  %v2801_v51 = vmax.f32 %v2783_v9, 0.0  ;;  %v334_v53 = vmax.f32 %v322_v11, 0.0  ;;  %v333_v1 = vmax.f32 %v321_v16, 0.0  ;;  %v325_v40 = vadd.f32 %v312_v2, %v6338_v46 }
 0x3c0   :  { %5777 = vmatprep.subr.msk.mxu1 %vm4963_vm10, %v2800_v58  ;;  %5775 = vmatpush1.msk.msra.mxu0 %vm4963_vm10, %v2797_v63  ;;  %v324_v38 = vadd.f32 %v312_v2, %v6333_v37  ;;  %v332_v15 = vmax.f32 %v320_v23, 0.0  ;;  %v4944_v37 = vpop.permute.xlu1 %4943 }
 0x3c1   :  { %5778 = vmatpush1.msk.msra.mxu1 %vm4963_vm10, %v2799_v6  ;;  %5776 = vmatmul.mubr.msk.f32.vlgmr.msra.gmra.mrb[10].mxu0 %vm4960_vm11, %v4959_v12  ;;  %v337_v61 = vmax.f32 %v325_v40, 0.0 }
 0x3c2   :  { %5780 = vmatprep.subr.msk.mxu0 %vm4963_vm10, %v2802_v62  ;;  %5786 = vmatprep.subr.msk.mxu1 %vm4963_vm10, %v335_v22  ;;  %v336_v46 = vmax.f32 %v324_v38, 0.0  ;;  %v5429_v25 = vpop.permute.xlu0 %5428 }
 0x3c3   :  { %5779 = vmatmul.mubr.msk.f32.vlgmr.msra.gmra.mrb[10].mxu1 %vm4960_vm11, %v4959_v12  ;;  %5781 = vmatpush1.msk.msra.mxu0 %vm4963_vm10, %v2801_v51 }
 0x3c4   :  { %5787 = vmatpush1.msk.msra.mxu1 %vm4963_vm10, %v334_v53  ;;  %5783 = vmatprep.subr.msk.mxu0 %vm4963_vm10, %v333_v1  ;;  %v5660_v31 = vpop.permute.xlu1 %5659 }
 0x3c5   :  { %5188 = vmatprep.mubr.f32.mxu0 %v5993_v3  ;;  %5350 = vmatprep.mubr.f32.mxu1 %v5993_v3 }
 0x3c6   :  { %5782 = vmatmul.mubr.msk.f32.vlgmr.msra.gmra.mrb[12].mxu0 %vm4960_vm11, %v4959_v12 }
 0x3c7   :  { %5784 = vmatpush1.msk.msra.mxu0 %vm4963_vm10, %v332_v15  ;;  %5279 = vmatprep.mubr.f32.mxu0 %v5993_v3 }
 0x3c8   :  { %5789 = vmatprep.subr.msk.mxu0 %vm4963_vm10, %v337_v61 }
 0x3ca   :  { %5785 = vmatmul.mubr.msk.f32.vlgmr.msra.gmra.mrb[10].mxu0 %vm4960_vm11, %v6802_v26 }
 0x3cb   :  { %5790 = vmatpush1.msk.msra.mxu0 %vm4963_vm10, %v336_v46  ;;  %5421 = vmatprep.mubr.f32.mxu0 %v5993_v3 }
 0x3cc   :  { %5788 = vmatmul.mubr.msk.f32.vlgmr.msra.gmra.mrb[10].mxu1 %vm4960_vm11, %v6802_v26 }
 0x3cd   :  { %5567 = vmatprep.mubr.f32.mxu1 %v5993_v3 }
 0x3ce   :  { %5791 = vmatmul.mubr.msk.f32.vlgmr.msra.gmra.mrb[12].mxu0 %vm4960_vm11, %v6802_v26 }
 0x3cf   :  { %5496 = vmatprep.mubr.f32.mxu0 %v5993_v3 }
 0x47d   :  { %v4788_v18 = vpop.f32.mrb[4].mxu0 }
 0x47e   :  { %v4946_v19 = vadd.f32 %v4944_v37, %v4788_v18  ;;  %v4790_v20 = vpop.f32.mrb[5].mxu0 }
 0x47f   :  { %v4947_v21 = vadd.f32 %v4944_v37, %v4790_v20 }
 0x480   :  { %v4952_v48 = vmax.f32 %v4946_v19, 0.0 }
 0x481   :  { %v4953_v32 = vmax.f32 %v4947_v21, 0.0  ;;  %v4859_v35 = vpop.f32.mrb[6].mxu0 }
 0x482   :  { %v4948_v45 = vadd.f32 %v4944_v37, %v4859_v35  ;;  %v4861_v7 = vpop.f32.mrb[7].mxu0 }
 0x483   :  { %v4949_v5 = vadd.f32 %v4944_v37, %v4861_v7  ;;  %5432 = vmatprep.subr.mxu0 %v4953_v32 }
 0x484   :  { %5433 = vmatpush1.msra.mxu0 %v4952_v48  ;;  %v4954_v26 = vmax.f32 %v4948_v45, 0.0 }
 0x485   :  { %v4955_v27 = vmax.f32 %v4949_v5, 0.0  ;;  %v4930_v28 = vpop.f32.mrb[8].mxu0  ;;  %5792 = vmatmul.mubr.msk.f32.vlgmr.msra.gmra.mrb[10].mxu0 %vm421_vm2, %v5429_v25 }
 0x486   :  { %v4950_v41 = vadd.f32 %v4944_v37, %v4930_v28  ;;  %v4932_v30 = vpop.f32.mrb[9].mxu0  ;;  %5638 = vmatprep.mubr.f32.mxu0 %v5993_v3 }
 0x487   :  { %v4951_v33 = vadd.f32 %v4944_v37, %v4932_v30  ;;  %5503 = vmatprep.subr.mxu1 %v4955_v27 }
 0x488   :  { %5504 = vmatpush1.msra.mxu1 %v4954_v26  ;;  %v4956_v29 = vmax.f32 %v4950_v41, 0.0 }
 0x489   :  { %v4957_v39 = vmax.f32 %v4951_v33, 0.0  ;;  %5793 = vmatmul.mubr.msk.f32.vlgmr.msra.gmra.mrb[10].mxu1 %vm421_vm2, %v5429_v25 }
 0x48b   :  { %5574 = vmatprep.subr.mxu0 %v4957_v39 }
 0x48c   :  { %5575 = vmatpush1.msra.mxu0 %v4956_v29 }
 0x48d   :  { %5794 = vmatmul.mubr.msk.f32.vlgmr.msra.gmra.mrb[12].mxu0 %vm421_vm2, %v5429_v25 }
 0x558   :  { %v5498_v8 = vpop.f32.mrb[10].mxu0 }
 0x559   :  { %v5809_v34 = vadd.f32 %v5498_v8, %v6132_v42  ;;  %v5500_v36 = vpop.f32.mrb[11].mxu0 }
 0x55a   :  { %v5810_v52 = vadd.f32 %v5500_v36, %v6139_v44 }
 0x55b   :  { %v5662_v49 = vadd.f32 %v5809_v34, %v5660_v31 }
 0x55c   :  { %v5663_v3 = vadd.f32 %v5810_v52, %v5660_v31  ;;  %v5569_v54 = vpop.f32.mrb[10].mxu1 }
 0x55d   :  { %v5668_v55 = vmax.f32 %v5662_v49, 0.0  ;;  %v5664_v0 = vadd.f32 %v5660_v31, %v5569_v54  ;;  %v5571_v17 = vpop.f32.mrb[11].mxu1 }
 0x55e   :  { %v5669_v4 = vmax.f32 %v5663_v3, 0.0  ;;  %v5665_v14 = vadd.f32 %v5660_v31, %v5571_v17 }
 0x55f   :  { %5674 = vst [vmem:[%s7039_s5] sm:$0xff] %v5668_v55  ;;  %v5670_v24 = vmax.f32 %v5664_v0, 0.0 }
 0x560   :  { %5675 = vst [vmem:[%s7039_s5 + $0x8] sm:$0xff] %v5669_v4  ;;  %v5671_v42 = vmax.f32 %v5665_v14, 0.0  ;;  %v5640_v43 = vpop.f32.mrb[12].mxu0 }
 0x561   :  { %5676 = vst [vmem:[%s7039_s5 + $0x10] sm:$0xff] %v5670_v24  ;;  %v5811_v44 = vadd.f32 %v5640_v43, %v6340_v47  ;;  %v5642_v56 = vpop.f32.mrb[13].mxu0 }
 0x562   :  { %5677 = vst [vmem:[%s7039_s5 + $0x18] sm:$0xff] %v5671_v42  ;;  %v5812_v2 = vadd.f32 %v5642_v56, %v6344_v50 }
 0x563   :  { %v5666_v59 = vadd.f32 %v5811_v44, %v5660_v31 }
 0x564   :  { %v5667_v9 = vadd.f32 %v5812_v2, %v5660_v31 }
 0x565   :  { %v5672_v57 = vmax.f32 %v5666_v59, 0.0 }
 0x566   :  { %v5673_v60 = vmax.f32 %v5667_v9, 0.0 }
 0x567   :  { %5678 = vst [vmem:[%s7039_s5 + $0x20] sm:$0xff] %v5672_v57 }
 0x568   :  { %5679 = vst [vmem:[%s7039_s5 + $0x28] sm:$0xff] %v5673_v60 }

</bundles_post_ra>
